<compile_context>
chip_gen: v7x
topology: tpu7x:2x2x1
jax: 0.10.0
libtpu: 0.0.40
codegen_flags: <defaults>
</compile_context>

<pallas_src>
import functools

import numpy as np

import jax
import jax.numpy as jnp
from jax.experimental import pallas as pl
from jax.experimental.pallas import tpu as pltpu


def _round_up(n, m):
    return ((n + m - 1) // m) * m


# ---------------------------------------------------------------------------
# Fused forward kernel: whole network for a batch tile, all in VMEM.
# ---------------------------------------------------------------------------
def _fused_cnn_kernel(x_ref, t1_ref, b1_ref, t2_ref, b2_ref,
                      wfc1_ref, bfc1_ref, wfc2_ref, bfc2_ref, out_ref):
    f32 = jnp.float32
    bt = x_ref.shape[1]                       # images in this grid block
    cdt = x_ref.dtype                         # bf16 MXU ingress dtype

    # (28, bt, 28) -> (28*bt, 28); row = h*bt + b.  bt % 16 == 0 keeps this a
    # pure re-labeling of the existing (sublane, lane) tiling.
    x2 = x_ref[...].reshape(28 * bt, 28)

    # ---- conv1 (7x7, 1->8) with the W direction of maxpool(2) baked in ----
    # t1[i] columns: [0, 88)    = even output columns (ow = 2*pw)
    #                [128, 216) = odd  output columns (ow = 2*pw + 1)
    y1 = jnp.dot(x2[:22 * bt, :], t1_ref[0], preferred_element_type=f32)
    for i in range(1, 7):                     # static unroll over kernel rows
        y1 = y1 + jnp.dot(x2[i * bt:(i + 22) * bt, :], t1_ref[i],
                          preferred_element_type=f32)
    p1 = jnp.maximum(y1[:, :128], y1[:, 128:])        # max over W-pool phase
    p1 = jnp.maximum(p1 + b1_ref[...], 0.0)           # bias + ReLU  (22*bt,128)
    # H direction of the pool: rows (2ph)*bt + b vs (2ph+1)*bt + b.
    p1 = p1.reshape(11, 2, bt, 128)
    q1 = jnp.maximum(p1[:, 0], p1[:, 1]).reshape(11 * bt, 128).astype(cdt)

    # ---- conv2 (5x5, 8->32) + W-pool phases --------------------------------
    # TODO(synk): Dropout2d treated as identity (eval/inference semantics).
    y2 = jnp.dot(q1[:7 * bt, :], t2_ref[0], preferred_element_type=f32)
    for i in range(1, 5):
        y2 = y2 + jnp.dot(q1[i * bt:(i + 7) * bt, :], t2_ref[i],
                          preferred_element_type=f32)
    p2 = jnp.maximum(y2[:, :128], y2[:, 128:])
    p2 = jnp.maximum(p2 + b2_ref[...], 0.0)           # (7*bt, 128)
    p2 = p2[:6 * bt].reshape(3, 2, bt, 128)           # row/col 6 dropped (floor)
    q2 = jnp.maximum(p2[:, 0], p2[:, 1]).astype(cdt)  # (3, bt, 128)

    # ---- fc1 (288->100) + ReLU (torch NCHW flatten folded into the weights)
    h1 = bfc1_ref[...] + jnp.dot(q2[0], wfc1_ref[0], preferred_element_type=f32)
    h1 = h1 + jnp.dot(q2[1], wfc1_ref[1], preferred_element_type=f32)
    h1 = h1 + jnp.dot(q2[2], wfc1_ref[2], preferred_element_type=f32)
    h1 = jnp.maximum(h1, 0.0).astype(cdt)             # (bt, 128)

    # ---- fc2 (100->10) + ReLU + log_softmax over the 10 real classes ------
    h2 = jnp.dot(h1, wfc2_ref[...], preferred_element_type=f32) + bfc2_ref[...]
    h2 = jnp.maximum(h2, 0.0)                         # (bt, 128)
    col = jax.lax.broadcasted_iota(jnp.int32, h2.shape, 1)
    h2 = jnp.where(col < 10, h2, -1e30)               # mask padded class cols
    z = h2 - jnp.max(h2, axis=-1, keepdims=True)
    out_ref[...] = z - jnp.log(jnp.sum(jnp.exp(z), axis=-1, keepdims=True))


# ---------------------------------------------------------------------------
# PyTorch-style parameter init (uniform +-1/sqrt(fan_in)).
# ---------------------------------------------------------------------------
def init_params(key):
    ks = jax.random.split(key, 8)

    def u(k, shape, fan_in):
        bound = 1.0 / np.sqrt(float(fan_in))
        return jax.random.uniform(k, shape, jnp.float32, -bound, bound)

    return {
        "conv1_w": u(ks[0], (8, 1, 7, 7), 1 * 7 * 7),
        "conv1_b": u(ks[1], (8,), 1 * 7 * 7),
        "conv2_w": u(ks[2], (32, 8, 5, 5), 8 * 5 * 5),
        "conv2_b": u(ks[3], (32,), 8 * 5 * 5),
        "fc1_w": u(ks[4], (100, 288), 288),   # torch Linear layout: (out, in)
        "fc1_b": u(ks[5], (100,), 288),
        "fc2_w": u(ks[6], (10, 100), 100),
        "fc2_b": u(ks[7], (10,), 100),
    }


# ---------------------------------------------------------------------------
# One-time parameter repacking (hoisted out of the hot path).
# ---------------------------------------------------------------------------
def prepare_params(params):
    """Repack CNN_Net params for the fused kernel (runs once).

    Conv weights become per-kernel-row Toeplitz matrices whose 256 output
    columns hold the two W-pool phases in aligned 128-column halves; fc1 is
    reordered to the kernel's (ph, co*3+pw) feature layout; matmul weights
    are bf16 (MXU ingress), biases stay f32 padded to 128 lanes.
    """
    w1 = np.asarray(params["conv1_w"], np.float32)   # (8, 1, 7, 7)
    b1 = np.asarray(params["conv1_b"], np.float32)
    w2 = np.asarray(params["conv2_w"], np.float32)   # (32, 8, 5, 5)
    b2 = np.asarray(params["conv2_b"], np.float32)
    fw1 = np.asarray(params["fc1_w"], np.float32)    # (100, 288)
    fb1 = np.asarray(params["fc1_b"], np.float32)
    fw2 = np.asarray(params["fc2_w"], np.float32)    # (10, 100)
    fb2 = np.asarray(params["fc2_b"], np.float32)

    # conv1: t1[i, 2*pw + par + j, par*128 + co*11 + pw] = w1[co, 0, i, j]
    t1 = np.zeros((7, 28, 256), np.float32)
    for par in range(2):
        for i in range(7):
            for co in range(8):
                for pw in range(11):
                    r0 = 2 * pw + par
                    t1[i, r0:r0 + 7, par * 128 + co * 11 + pw] = w1[co, 0, i, :]
    b1p = np.zeros((1, 128), np.float32)
    b1p[0, :88] = np.repeat(b1, 11)

    # conv2: t2[i, ci*11 + 2*pw + par + j, par*128 + co*3 + pw] = w2[co, ci, i, j]
    t2 = np.zeros((5, 128, 256), np.float32)
    for par in range(2):
        for i in range(5):
            for co in range(32):
                for ci in range(8):
                    for pw in range(3):
                        r0 = ci * 11 + 2 * pw + par
                        t2[i, r0:r0 + 5, par * 128 + co * 3 + pw] = w2[co, ci, i, :]
    b2p = np.zeros((1, 128), np.float32)
    b2p[0, :96] = np.repeat(b2, 3)

    # fc1: kernel feature layout is [ph, co*3 + pw]; torch flatten is co*9+ph*3+pw
    wfc1 = np.zeros((3, 128, 128), np.float32)
    wfc1[:, :96, :100] = np.transpose(
        fw1.reshape(100, 32, 3, 3), (2, 1, 3, 0)).reshape(3, 96, 100)
    bfc1 = np.zeros((1, 128), np.float32)
    bfc1[0, :100] = fb1

    wfc2 = np.zeros((128, 128), np.float32)
    wfc2[:100, :10] = fw2.T
    bfc2 = np.zeros((1, 128), np.float32)
    bfc2[0, :10] = fb2

    bf16 = jnp.bfloat16
    return {
        "t1": jnp.asarray(t1, bf16), "b1": jnp.asarray(b1p),
        "t2": jnp.asarray(t2, bf16), "b2": jnp.asarray(b2p),
        "wfc1": jnp.asarray(wfc1, bf16), "bfc1": jnp.asarray(bfc1),
        "wfc2": jnp.asarray(wfc2, bf16), "bfc2": jnp.asarray(bfc2),
    }


# ---------------------------------------------------------------------------
# Forward: a single fused pallas_call, batch-tiled "parallel" grid.
# ---------------------------------------------------------------------------
@functools.partial(jax.jit, static_argnames=("batch_tile",))
def cnn_net_forward(x, prep, *, batch_tile=128):
    """Fused CNN_Net forward.  x: (B, 1, 28, 28) or (B, 28, 28)."""
    x = x.astype(jnp.float32)
    if x.ndim == 4:
        assert x.shape[1] == 1, "CNN_Net expects a single input channel"
        x = x[:, 0]
    B, H, W = x.shape
    assert (H, W) == (28, 28), "fc1(288) implies 28x28 single-channel inputs"

    # Batch tile: multiple of 16 (keeps every in-kernel reshape tile-aligned),
    # capped at `batch_tile`; the batch is split into roughly equal tiles so
    # large batches get >= 2 grid steps (both v7x TensorCores busy).
    cap = max(16, (batch_tile // 16) * 16)
    nsteps = max(1, -(-B // cap))
    bt = _round_up(-(-B // nsteps), 16)
    b_pad = bt * nsteps

    xb = x.astype(jnp.bfloat16)               # bf16 MXU ingress, half the DMA
    if b_pad != B:
        xb = jnp.pad(xb, ((0, b_pad - B), (0, 0), (0, 0)))
    xt = jnp.transpose(xb, (1, 0, 2))         # (28, b_pad, 28): h-major layout

    def _full(arr):
        return pl.BlockSpec(arr.shape, lambda g, n=arr.ndim: (0,) * n)

    out = pl.pallas_call(
        _fused_cnn_kernel,
        out_shape=jax.ShapeDtypeStruct((b_pad, 128), jnp.float32),
        grid=(b_pad // bt,),
        in_specs=[
            pl.BlockSpec((28, bt, 28), lambda g: (0, g, 0)),
            _full(prep["t1"]), _full(prep["b1"]),
            _full(prep["t2"]), _full(prep["b2"]),
            _full(prep["wfc1"]), _full(prep["bfc1"]),
            _full(prep["wfc2"]), _full(prep["bfc2"]),
        ],
        out_specs=pl.BlockSpec((bt, 128), lambda g: (g, 0)),
        compiler_params=pltpu.CompilerParams(
            dimension_semantics=("parallel",),
            vmem_limit_bytes=32 * 1024 * 1024,
        ),
    )(xt, prep["t1"], prep["b1"], prep["t2"], prep["b2"],
      prep["wfc1"], prep["bfc1"], prep["wfc2"], prep["bfc2"])
    return out[:B, :10]


# ---------------------------------------------------------------------------
# Pure-JAX (XLA) f32 reference of the PyTorch module, for validation only.
# ---------------------------------------------------------------------------
def _maxpool2(y):
    B, C, H, W = y.shape
    ho, wo = H // 2, W // 2
    y = y[:, :, :ho * 2, :wo * 2].reshape(B, C, ho, 2, wo, 2)
    return jnp.max(y, axis=(3, 5))


def reference_forward(x, params):
    hp = jax.lax.Precision.HIGHEST
    dn = ("NCHW", "OIHW", "NCHW")
    y = jax.lax.conv_general_dilated(x, params["conv1_w"], (1, 1), "VALID",
                                     dimension_numbers=dn, precision=hp)
    y = y + params["conv1_b"][None, :, None, None]
    y = jnp.maximum(_maxpool2(y), 0.0)
    y = jax.lax.conv_general_dilated(y, params["conv2_w"], (1, 1), "VALID",
                                     dimension_numbers=dn, precision=hp)
    y = y + params["conv2_b"][None, :, None, None]
    y = jnp.maximum(_maxpool2(y), 0.0)
    y = y.reshape(y.shape[0], 288)
    y = jnp.maximum(jnp.dot(y, params["fc1_w"].T, precision=hp) + params["fc1_b"], 0.0)
    y = jnp.maximum(jnp.dot(y, params["fc2_w"].T, precision=hp) + params["fc2_b"], 0.0)
    return jax.nn.log_softmax(y, axis=-1)


if __name__ == "__main__":
    key = jax.random.PRNGKey(0)
    pkey, xkey = jax.random.split(key)
    params = init_params(pkey)
    prep = prepare_params(params)       # one-time weight repack (off hot path)

    # MNIST-shaped input: the module's fc1(288) implies 28x28 single-channel.
    x = jax.random.normal(xkey, (2, 1, 28, 28), jnp.float32)

    out = jax.block_until_ready(cnn_net_forward(x, prep))
    assert out.shape == (2, 10)
    assert bool(jnp.all(jnp.isfinite(out)))

    # Validate against a plain-XLA f32 reference (kernel uses bf16 MXU ingress).
    ref = jax.block_until_ready(reference_forward(x, params))
    max_err = float(jnp.max(jnp.abs(out - ref)))
    assert max_err < 5e-2, f"kernel/reference mismatch: max |diff| = {max_err}"
    print("KERNEL_OK")
</pallas_src>

<mosaic_0001>
module attributes {stable_mosaic.version = 11 : i64} {
  func.func @_fused_cnn_kernel(%arg0: i32, %arg1: memref<28x16x28xbf16, #tpu.memory_space<vmem>>, %arg2: memref<7x28x256xbf16, #tpu.memory_space<vmem>>, %arg3: memref<1x128xf32, #tpu.memory_space<vmem>>, %arg4: memref<5x128x256xbf16, #tpu.memory_space<vmem>>, %arg5: memref<1x128xf32, #tpu.memory_space<vmem>>, %arg6: memref<3x128x128xbf16, #tpu.memory_space<vmem>>, %arg7: memref<1x128xf32, #tpu.memory_space<vmem>>, %arg8: memref<128x128xbf16, #tpu.memory_space<vmem>>, %arg9: memref<1x128xf32, #tpu.memory_space<vmem>>, %arg10: memref<16x128xf32, #tpu.memory_space<vmem>>) attributes {dimension_semantics = [#tpu.dimension_semantics<parallel>], iteration_bounds = array<i64: 1>, scalar_prefetch = 0 : i64, scratch_operands = 0 : i64, tpu.core_type = #tpu.core_type<tc>, window_params = [{transform_indices = @transform_0, window_bounds = array<i64: 28, 16, 28>}, {pipeline_mode = #tpu.pipeline_mode<synchronous>, transform_indices = @transform_1, window_bounds = array<i64: 7, 28, 256>}, {pipeline_mode = #tpu.pipeline_mode<synchronous>, transform_indices = @transform_2, window_bounds = array<i64: 1, 128>}, {pipeline_mode = #tpu.pipeline_mode<synchronous>, transform_indices = @transform_3, window_bounds = array<i64: 5, 128, 256>}, {pipeline_mode = #tpu.pipeline_mode<synchronous>, transform_indices = @transform_4, window_bounds = array<i64: 1, 128>}, {pipeline_mode = #tpu.pipeline_mode<synchronous>, transform_indices = @transform_5, window_bounds = array<i64: 3, 128, 128>}, {pipeline_mode = #tpu.pipeline_mode<synchronous>, transform_indices = @transform_6, window_bounds = array<i64: 1, 128>}, {pipeline_mode = #tpu.pipeline_mode<synchronous>, transform_indices = @transform_7, window_bounds = array<i64: 128, 128>}, {pipeline_mode = #tpu.pipeline_mode<synchronous>, transform_indices = @transform_8, window_bounds = array<i64: 1, 128>}, {transform_indices = @transform_9, window_bounds = array<i64: 16, 128>}]} {
    %c0 = arith.constant 0 : index
    %c0_0 = arith.constant 0 : index
    %c0_1 = arith.constant 0 : index
    %0 = vector.load %arg1[%c0, %c0_0, %c0_1] : memref<28x16x28xbf16, #tpu.memory_space<vmem>>, vector<28x16x28xbf16>
    %1 = vector.shape_cast %0 : vector<28x16x28xbf16> to vector<448x28xbf16>
    %2 = vector.extract_strided_slice %1 {offsets = [0, 0], sizes = [352, 28], strides = [1, 1]} : vector<448x28xbf16> to vector<352x28xbf16>
    %c0_2 = arith.constant 0 : index
    %c0_3 = arith.constant 0 : index
    %c0_4 = arith.constant 0 : index
    %3 = vector.load %arg2[%c0_2, %c0_3, %c0_4] : memref<7x28x256xbf16, #tpu.memory_space<vmem>>, vector<1x28x256xbf16>
    %4 = vector.shape_cast %3 : vector<1x28x256xbf16> to vector<28x256xbf16>
    %cst = arith.constant dense<0.000000e+00> : vector<352x256xf32>
    %5 = tpu.matmul %2, %4, %cst {dimension_numbers = #tpu.dot_dimension_numbers<[1], [0], [0], [1], [0, 0, 1, 1], [], []>} : vector<352x28xbf16>, vector<28x256xbf16>, vector<352x256xf32> -> vector<352x256xf32>
    %6 = vector.extract_strided_slice %1 {offsets = [16, 0], sizes = [352, 28], strides = [1, 1]} : vector<448x28xbf16> to vector<352x28xbf16>
    %c1 = arith.constant 1 : index
    %c0_5 = arith.constant 0 : index
    %c0_6 = arith.constant 0 : index
    %7 = vector.load %arg2[%c1, %c0_5, %c0_6] : memref<7x28x256xbf16, #tpu.memory_space<vmem>>, vector<1x28x256xbf16>
    %8 = vector.shape_cast %7 : vector<1x28x256xbf16> to vector<28x256xbf16>
    %cst_7 = arith.constant dense<0.000000e+00> : vector<352x256xf32>
    %9 = tpu.matmul %6, %8, %cst_7 {dimension_numbers = #tpu.dot_dimension_numbers<[1], [0], [0], [1], [0, 0, 1, 1], [], []>} : vector<352x28xbf16>, vector<28x256xbf16>, vector<352x256xf32> -> vector<352x256xf32>
    %10 = arith.addf %5, %9 : vector<352x256xf32>
    %11 = vector.extract_strided_slice %1 {offsets = [32, 0], sizes = [352, 28], strides = [1, 1]} : vector<448x28xbf16> to vector<352x28xbf16>
    %c2 = arith.constant 2 : index
    %c0_8 = arith.constant 0 : index
    %c0_9 = arith.constant 0 : index
    %12 = vector.load %arg2[%c2, %c0_8, %c0_9] : memref<7x28x256xbf16, #tpu.memory_space<vmem>>, vector<1x28x256xbf16>
    %13 = vector.shape_cast %12 : vector<1x28x256xbf16> to vector<28x256xbf16>
    %cst_10 = arith.constant dense<0.000000e+00> : vector<352x256xf32>
    %14 = tpu.matmul %11, %13, %cst_10 {dimension_numbers = #tpu.dot_dimension_numbers<[1], [0], [0], [1], [0, 0, 1, 1], [], []>} : vector<352x28xbf16>, vector<28x256xbf16>, vector<352x256xf32> -> vector<352x256xf32>
    %15 = arith.addf %10, %14 : vector<352x256xf32>
    %16 = vector.extract_strided_slice %1 {offsets = [48, 0], sizes = [352, 28], strides = [1, 1]} : vector<448x28xbf16> to vector<352x28xbf16>
    %c3 = arith.constant 3 : index
    %c0_11 = arith.constant 0 : index
    %c0_12 = arith.constant 0 : index
    %17 = vector.load %arg2[%c3, %c0_11, %c0_12] : memref<7x28x256xbf16, #tpu.memory_space<vmem>>, vector<1x28x256xbf16>
    %18 = vector.shape_cast %17 : vector<1x28x256xbf16> to vector<28x256xbf16>
    %cst_13 = arith.constant dense<0.000000e+00> : vector<352x256xf32>
    %19 = tpu.matmul %16, %18, %cst_13 {dimension_numbers = #tpu.dot_dimension_numbers<[1], [0], [0], [1], [0, 0, 1, 1], [], []>} : vector<352x28xbf16>, vector<28x256xbf16>, vector<352x256xf32> -> vector<352x256xf32>
    %20 = arith.addf %15, %19 : vector<352x256xf32>
    %21 = vector.extract_strided_slice %1 {offsets = [64, 0], sizes = [352, 28], strides = [1, 1]} : vector<448x28xbf16> to vector<352x28xbf16>
    %c4 = arith.constant 4 : index
    %c0_14 = arith.constant 0 : index
    %c0_15 = arith.constant 0 : index
    %22 = vector.load %arg2[%c4, %c0_14, %c0_15] : memref<7x28x256xbf16, #tpu.memory_space<vmem>>, vector<1x28x256xbf16>
    %23 = vector.shape_cast %22 : vector<1x28x256xbf16> to vector<28x256xbf16>
    %cst_16 = arith.constant dense<0.000000e+00> : vector<352x256xf32>
    %24 = tpu.matmul %21, %23, %cst_16 {dimension_numbers = #tpu.dot_dimension_numbers<[1], [0], [0], [1], [0, 0, 1, 1], [], []>} : vector<352x28xbf16>, vector<28x256xbf16>, vector<352x256xf32> -> vector<352x256xf32>
    %25 = arith.addf %20, %24 : vector<352x256xf32>
    %26 = vector.extract_strided_slice %1 {offsets = [80, 0], sizes = [352, 28], strides = [1, 1]} : vector<448x28xbf16> to vector<352x28xbf16>
    %c5 = arith.constant 5 : index
    %c0_17 = arith.constant 0 : index
    %c0_18 = arith.constant 0 : index
    %27 = vector.load %arg2[%c5, %c0_17, %c0_18] : memref<7x28x256xbf16, #tpu.memory_space<vmem>>, vector<1x28x256xbf16>
    %28 = vector.shape_cast %27 : vector<1x28x256xbf16> to vector<28x256xbf16>
    %cst_19 = arith.constant dense<0.000000e+00> : vector<352x256xf32>
    %29 = tpu.matmul %26, %28, %cst_19 {dimension_numbers = #tpu.dot_dimension_numbers<[1], [0], [0], [1], [0, 0, 1, 1], [], []>} : vector<352x28xbf16>, vector<28x256xbf16>, vector<352x256xf32> -> vector<352x256xf32>
    %30 = arith.addf %25, %29 : vector<352x256xf32>
    %31 = vector.extract_strided_slice %1 {offsets = [96, 0], sizes = [352, 28], strides = [1, 1]} : vector<448x28xbf16> to vector<352x28xbf16>
    %c6 = arith.constant 6 : index
    %c0_20 = arith.constant 0 : index
    %c0_21 = arith.constant 0 : index
    %32 = vector.load %arg2[%c6, %c0_20, %c0_21] : memref<7x28x256xbf16, #tpu.memory_space<vmem>>, vector<1x28x256xbf16>
    %33 = vector.shape_cast %32 : vector<1x28x256xbf16> to vector<28x256xbf16>
    %cst_22 = arith.constant dense<0.000000e+00> : vector<352x256xf32>
    %34 = tpu.matmul %31, %33, %cst_22 {dimension_numbers = #tpu.dot_dimension_numbers<[1], [0], [0], [1], [0, 0, 1, 1], [], []>} : vector<352x28xbf16>, vector<28x256xbf16>, vector<352x256xf32> -> vector<352x256xf32>
    %35 = arith.addf %30, %34 : vector<352x256xf32>
    %36 = vector.extract_strided_slice %35 {offsets = [0, 0], sizes = [352, 128], strides = [1, 1]} : vector<352x256xf32> to vector<352x128xf32>
    %37 = vector.extract_strided_slice %35 {offsets = [0, 128], sizes = [352, 128], strides = [1, 1]} : vector<352x256xf32> to vector<352x128xf32>
    %38 = arith.maximumf %36, %37 : vector<352x128xf32>
    %c0_23 = arith.constant 0 : index
    %c0_24 = arith.constant 0 : index
    %39 = vector.load %arg3[%c0_23, %c0_24] : memref<1x128xf32, #tpu.memory_space<vmem>>, vector<1x128xf32>
    %40 = vector.broadcast %39 : vector<1x128xf32> to vector<352x128xf32>
    %41 = arith.addf %38, %40 : vector<352x128xf32>
    %cst_25 = arith.constant 0.000000e+00 : f32
    %42 = vector.broadcast %cst_25 : f32 to vector<352x128xf32>
    %43 = arith.maximumf %41, %42 : vector<352x128xf32>
    %44 = vector.shape_cast %43 : vector<352x128xf32> to vector<11x2x16x128xf32>
    %45 = vector.extract_strided_slice %44 {offsets = [0, 0, 0, 0], sizes = [11, 1, 16, 128], strides = [1, 1, 1, 1]} : vector<11x2x16x128xf32> to vector<11x1x16x128xf32>
    %46 = vector.shape_cast %45 : vector<11x1x16x128xf32> to vector<11x16x128xf32>
    %47 = vector.extract_strided_slice %44 {offsets = [0, 1, 0, 0], sizes = [11, 1, 16, 128], strides = [1, 1, 1, 1]} : vector<11x2x16x128xf32> to vector<11x1x16x128xf32>
    %48 = vector.shape_cast %47 : vector<11x1x16x128xf32> to vector<11x16x128xf32>
    %49 = arith.maximumf %46, %48 : vector<11x16x128xf32>
    %50 = vector.shape_cast %49 : vector<11x16x128xf32> to vector<176x128xf32>
    %51 = arith.truncf %50 : vector<176x128xf32> to vector<176x128xbf16>
    %52 = vector.extract_strided_slice %51 {offsets = [0, 0], sizes = [112, 128], strides = [1, 1]} : vector<176x128xbf16> to vector<112x128xbf16>
    %c0_26 = arith.constant 0 : index
    %c0_27 = arith.constant 0 : index
    %c0_28 = arith.constant 0 : index
    %53 = vector.load %arg4[%c0_26, %c0_27, %c0_28] : memref<5x128x256xbf16, #tpu.memory_space<vmem>>, vector<1x128x256xbf16>
    %54 = vector.shape_cast %53 : vector<1x128x256xbf16> to vector<128x256xbf16>
    %cst_29 = arith.constant dense<0.000000e+00> : vector<112x256xf32>
    %55 = tpu.matmul %52, %54, %cst_29 {dimension_numbers = #tpu.dot_dimension_numbers<[1], [0], [0], [1], [0, 0, 1, 1], [], []>} : vector<112x128xbf16>, vector<128x256xbf16>, vector<112x256xf32> -> vector<112x256xf32>
    %56 = vector.extract_strided_slice %51 {offsets = [16, 0], sizes = [112, 128], strides = [1, 1]} : vector<176x128xbf16> to vector<112x128xbf16>
    %c1_30 = arith.constant 1 : index
    %c0_31 = arith.constant 0 : index
    %c0_32 = arith.constant 0 : index
    %57 = vector.load %arg4[%c1_30, %c0_31, %c0_32] : memref<5x128x256xbf16, #tpu.memory_space<vmem>>, vector<1x128x256xbf16>
    %58 = vector.shape_cast %57 : vector<1x128x256xbf16> to vector<128x256xbf16>
    %cst_33 = arith.constant dense<0.000000e+00> : vector<112x256xf32>
    %59 = tpu.matmul %56, %58, %cst_33 {dimension_numbers = #tpu.dot_dimension_numbers<[1], [0], [0], [1], [0, 0, 1, 1], [], []>} : vector<112x128xbf16>, vector<128x256xbf16>, vector<112x256xf32> -> vector<112x256xf32>
    %60 = arith.addf %55, %59 : vector<112x256xf32>
    %61 = vector.extract_strided_slice %51 {offsets = [32, 0], sizes = [112, 128], strides = [1, 1]} : vector<176x128xbf16> to vector<112x128xbf16>
    %c2_34 = arith.constant 2 : index
    %c0_35 = arith.constant 0 : index
    %c0_36 = arith.constant 0 : index
    %62 = vector.load %arg4[%c2_34, %c0_35, %c0_36] : memref<5x128x256xbf16, #tpu.memory_space<vmem>>, vector<1x128x256xbf16>
    %63 = vector.shape_cast %62 : vector<1x128x256xbf16> to vector<128x256xbf16>
    %cst_37 = arith.constant dense<0.000000e+00> : vector<112x256xf32>
    %64 = tpu.matmul %61, %63, %cst_37 {dimension_numbers = #tpu.dot_dimension_numbers<[1], [0], [0], [1], [0, 0, 1, 1], [], []>} : vector<112x128xbf16>, vector<128x256xbf16>, vector<112x256xf32> -> vector<112x256xf32>
    %65 = arith.addf %60, %64 : vector<112x256xf32>
    %66 = vector.extract_strided_slice %51 {offsets = [48, 0], sizes = [112, 128], strides = [1, 1]} : vector<176x128xbf16> to vector<112x128xbf16>
    %c3_38 = arith.constant 3 : index
    %c0_39 = arith.constant 0 : index
    %c0_40 = arith.constant 0 : index
    %67 = vector.load %arg4[%c3_38, %c0_39, %c0_40] : memref<5x128x256xbf16, #tpu.memory_space<vmem>>, vector<1x128x256xbf16>
    %68 = vector.shape_cast %67 : vector<1x128x256xbf16> to vector<128x256xbf16>
    %cst_41 = arith.constant dense<0.000000e+00> : vector<112x256xf32>
    %69 = tpu.matmul %66, %68, %cst_41 {dimension_numbers = #tpu.dot_dimension_numbers<[1], [0], [0], [1], [0, 0, 1, 1], [], []>} : vector<112x128xbf16>, vector<128x256xbf16>, vector<112x256xf32> -> vector<112x256xf32>
    %70 = arith.addf %65, %69 : vector<112x256xf32>
    %71 = vector.extract_strided_slice %51 {offsets = [64, 0], sizes = [112, 128], strides = [1, 1]} : vector<176x128xbf16> to vector<112x128xbf16>
    %c4_42 = arith.constant 4 : index
    %c0_43 = arith.constant 0 : index
    %c0_44 = arith.constant 0 : index
    %72 = vector.load %arg4[%c4_42, %c0_43, %c0_44] : memref<5x128x256xbf16, #tpu.memory_space<vmem>>, vector<1x128x256xbf16>
    %73 = vector.shape_cast %72 : vector<1x128x256xbf16> to vector<128x256xbf16>
    %cst_45 = arith.constant dense<0.000000e+00> : vector<112x256xf32>
    %74 = tpu.matmul %71, %73, %cst_45 {dimension_numbers = #tpu.dot_dimension_numbers<[1], [0], [0], [1], [0, 0, 1, 1], [], []>} : vector<112x128xbf16>, vector<128x256xbf16>, vector<112x256xf32> -> vector<112x256xf32>
    %75 = arith.addf %70, %74 : vector<112x256xf32>
    %76 = vector.extract_strided_slice %75 {offsets = [0, 0], sizes = [112, 128], strides = [1, 1]} : vector<112x256xf32> to vector<112x128xf32>
    %77 = vector.extract_strided_slice %75 {offsets = [0, 128], sizes = [112, 128], strides = [1, 1]} : vector<112x256xf32> to vector<112x128xf32>
    %78 = arith.maximumf %76, %77 : vector<112x128xf32>
    %c0_46 = arith.constant 0 : index
    %c0_47 = arith.constant 0 : index
    %79 = vector.load %arg5[%c0_46, %c0_47] : memref<1x128xf32, #tpu.memory_space<vmem>>, vector<1x128xf32>
    %80 = vector.broadcast %79 : vector<1x128xf32> to vector<112x128xf32>
    %81 = arith.addf %78, %80 : vector<112x128xf32>
    %cst_48 = arith.constant 0.000000e+00 : f32
    %82 = vector.broadcast %cst_48 : f32 to vector<112x128xf32>
    %83 = arith.maximumf %81, %82 : vector<112x128xf32>
    %84 = vector.extract_strided_slice %83 {offsets = [0, 0], sizes = [96, 128], strides = [1, 1]} : vector<112x128xf32> to vector<96x128xf32>
    %85 = vector.shape_cast %84 : vector<96x128xf32> to vector<3x2x16x128xf32>
    %86 = vector.extract_strided_slice %85 {offsets = [0, 0, 0, 0], sizes = [3, 1, 16, 128], strides = [1, 1, 1, 1]} : vector<3x2x16x128xf32> to vector<3x1x16x128xf32>
    %87 = vector.shape_cast %86 : vector<3x1x16x128xf32> to vector<3x16x128xf32>
    %88 = vector.extract_strided_slice %85 {offsets = [0, 1, 0, 0], sizes = [3, 1, 16, 128], strides = [1, 1, 1, 1]} : vector<3x2x16x128xf32> to vector<3x1x16x128xf32>
    %89 = vector.shape_cast %88 : vector<3x1x16x128xf32> to vector<3x16x128xf32>
    %90 = arith.maximumf %87, %89 : vector<3x16x128xf32>
    %91 = arith.truncf %90 : vector<3x16x128xf32> to vector<3x16x128xbf16>
    %c0_49 = arith.constant 0 : index
    %c0_50 = arith.constant 0 : index
    %92 = vector.load %arg7[%c0_49, %c0_50] : memref<1x128xf32, #tpu.memory_space<vmem>>, vector<1x128xf32>
    %93 = vector.extract_strided_slice %91 {offsets = [0, 0, 0], sizes = [1, 16, 128], strides = [1, 1, 1]} : vector<3x16x128xbf16> to vector<1x16x128xbf16>
    %94 = vector.shape_cast %93 : vector<1x16x128xbf16> to vector<16x128xbf16>
    %c0_51 = arith.constant 0 : index
    %c0_52 = arith.constant 0 : index
    %c0_53 = arith.constant 0 : index
    %95 = vector.load %arg6[%c0_51, %c0_52, %c0_53] : memref<3x128x128xbf16, #tpu.memory_space<vmem>>, vector<1x128x128xbf16>
    %96 = vector.shape_cast %95 : vector<1x128x128xbf16> to vector<128x128xbf16>
    %cst_54 = arith.constant dense<0.000000e+00> : vector<16x128xf32>
    %97 = tpu.matmul %94, %96, %cst_54 {dimension_numbers = #tpu.dot_dimension_numbers<[1], [0], [0], [1], [0, 0, 1, 1], [], []>} : vector<16x128xbf16>, vector<128x128xbf16>, vector<16x128xf32> -> vector<16x128xf32>
    %98 = vector.broadcast %92 : vector<1x128xf32> to vector<16x128xf32>
    %99 = arith.addf %98, %97 : vector<16x128xf32>
    %100 = vector.extract_strided_slice %91 {offsets = [1, 0, 0], sizes = [1, 16, 128], strides = [1, 1, 1]} : vector<3x16x128xbf16> to vector<1x16x128xbf16>
    %101 = vector.shape_cast %100 : vector<1x16x128xbf16> to vector<16x128xbf16>
    %c1_55 = arith.constant 1 : index
    %c0_56 = arith.constant 0 : index
    %c0_57 = arith.constant 0 : index
    %102 = vector.load %arg6[%c1_55, %c0_56, %c0_57] : memref<3x128x128xbf16, #tpu.memory_space<vmem>>, vector<1x128x128xbf16>
    %103 = vector.shape_cast %102 : vector<1x128x128xbf16> to vector<128x128xbf16>
    %cst_58 = arith.constant dense<0.000000e+00> : vector<16x128xf32>
    %104 = tpu.matmul %101, %103, %cst_58 {dimension_numbers = #tpu.dot_dimension_numbers<[1], [0], [0], [1], [0, 0, 1, 1], [], []>} : vector<16x128xbf16>, vector<128x128xbf16>, vector<16x128xf32> -> vector<16x128xf32>
    %105 = arith.addf %99, %104 : vector<16x128xf32>
    %106 = vector.extract_strided_slice %91 {offsets = [2, 0, 0], sizes = [1, 16, 128], strides = [1, 1, 1]} : vector<3x16x128xbf16> to vector<1x16x128xbf16>
    %107 = vector.shape_cast %106 : vector<1x16x128xbf16> to vector<16x128xbf16>
    %c2_59 = arith.constant 2 : index
    %c0_60 = arith.constant 0 : index
    %c0_61 = arith.constant 0 : index
    %108 = vector.load %arg6[%c2_59, %c0_60, %c0_61] : memref<3x128x128xbf16, #tpu.memory_space<vmem>>, vector<1x128x128xbf16>
    %109 = vector.shape_cast %108 : vector<1x128x128xbf16> to vector<128x128xbf16>
    %cst_62 = arith.constant dense<0.000000e+00> : vector<16x128xf32>
    %110 = tpu.matmul %107, %109, %cst_62 {dimension_numbers = #tpu.dot_dimension_numbers<[1], [0], [0], [1], [0, 0, 1, 1], [], []>} : vector<16x128xbf16>, vector<128x128xbf16>, vector<16x128xf32> -> vector<16x128xf32>
    %111 = arith.addf %105, %110 : vector<16x128xf32>
    %cst_63 = arith.constant 0.000000e+00 : f32
    %112 = vector.broadcast %cst_63 : f32 to vector<16x128xf32>
    %113 = arith.maximumf %111, %112 : vector<16x128xf32>
    %114 = arith.truncf %113 : vector<16x128xf32> to vector<16x128xbf16>
    %c0_64 = arith.constant 0 : index
    %c0_65 = arith.constant 0 : index
    %115 = vector.load %arg8[%c0_64, %c0_65] : memref<128x128xbf16, #tpu.memory_space<vmem>>, vector<128x128xbf16>
    %cst_66 = arith.constant dense<0.000000e+00> : vector<16x128xf32>
    %116 = tpu.matmul %114, %115, %cst_66 {dimension_numbers = #tpu.dot_dimension_numbers<[1], [0], [0], [1], [0, 0, 1, 1], [], []>} : vector<16x128xbf16>, vector<128x128xbf16>, vector<16x128xf32> -> vector<16x128xf32>
    %c0_67 = arith.constant 0 : index
    %c0_68 = arith.constant 0 : index
    %117 = vector.load %arg9[%c0_67, %c0_68] : memref<1x128xf32, #tpu.memory_space<vmem>>, vector<1x128xf32>
    %118 = vector.broadcast %117 : vector<1x128xf32> to vector<16x128xf32>
    %119 = arith.addf %116, %118 : vector<16x128xf32>
    %cst_69 = arith.constant 0.000000e+00 : f32
    %120 = vector.broadcast %cst_69 : f32 to vector<16x128xf32>
    %121 = arith.maximumf %119, %120 : vector<16x128xf32>
    %122 = tpu.iota {dimensions = array<i32: 1>} : vector<16x128xi32>
    %c10_i32 = arith.constant 10 : i32
    %123 = vector.broadcast %c10_i32 : i32 to vector<16x128xi32>
    %124 = arith.cmpi slt, %122, %123 : vector<16x128xi32>
    %cst_70 = arith.constant -1.000000e+30 : f32
    %125 = vector.broadcast %cst_70 : f32 to vector<16x128xf32>
    %126 = arith.select %124, %121, %125 : vector<16x128xi1>, vector<16x128xf32>
    %cst_71 = arith.constant dense<0xFF800000> : vector<16xf32>
    %127 = vector.multi_reduction <maximumf>, %126, %cst_71 [1] : vector<16x128xf32> to vector<16xf32>
    %128 = vector.shape_cast %127 : vector<16xf32> to vector<16x1xf32>
    %129 = vector.broadcast %128 : vector<16x1xf32> to vector<16x128xf32>
    %130 = arith.subf %126, %129 : vector<16x128xf32>
    %131 = math.exp %130 : vector<16x128xf32>
    %cst_72 = arith.constant dense<0.000000e+00> : vector<16xf32>
    %132 = vector.multi_reduction <add>, %131, %cst_72 [1] : vector<16x128xf32> to vector<16xf32>
    %133 = vector.shape_cast %132 : vector<16xf32> to vector<16x1xf32>
    %134 = math.log %133 : vector<16x1xf32>
    %135 = vector.broadcast %134 : vector<16x1xf32> to vector<16x128xf32>
    %136 = arith.subf %130, %135 : vector<16x128xf32>
    %c0_73 = arith.constant 0 : index
    %c0_74 = arith.constant 0 : index
    %137 = vector.load %arg10[%c0_73, %c0_74] : memref<16x128xf32, #tpu.memory_space<vmem>>, vector<16x128xf32>
    tpu.vector_store %arg10[%c0_73, %c0_74], %136 {strides = array<i32>} : memref<16x128xf32, #tpu.memory_space<vmem>>, vector<16x128xf32>,
    return
  }
  func.func @transform_0(%arg0: i32) -> (i32, i32, i32) {
    %c0_i32 = arith.constant 0 : i32
    %c0_i32_0 = arith.constant 0 : i32
    %c0_i32_1 = arith.constant 0 : i32
    return %c0_i32, %arg0, %c0_i32_0 : i32, i32, i32
  }
  func.func @transform_1(%arg0: i32) -> (i32, i32, i32) {
    %c0_i32 = arith.constant 0 : i32
    %c0_i32_0 = arith.constant 0 : i32
    %c0_i32_1 = arith.constant 0 : i32
    %c0_i32_2 = arith.constant 0 : i32
    return %c0_i32, %c0_i32_0, %c0_i32_1 : i32, i32, i32
  }
  func.func @transform_2(%arg0: i32) -> (i32, i32) {
    %c0_i32 = arith.constant 0 : i32
    %c0_i32_0 = arith.constant 0 : i32
    %c0_i32_1 = arith.constant 0 : i32
    return %c0_i32, %c0_i32_0 : i32, i32
  }
  func.func @transform_3(%arg0: i32) -> (i32, i32, i32) {
    %c0_i32 = arith.constant 0 : i32
    %c0_i32_0 = arith.constant 0 : i32
    %c0_i32_1 = arith.constant 0 : i32
    %c0_i32_2 = arith.constant 0 : i32
    return %c0_i32, %c0_i32_0, %c0_i32_1 : i32, i32, i32
  }
  func.func @transform_4(%arg0: i32) -> (i32, i32) {
    %c0_i32 = arith.constant 0 : i32
    %c0_i32_0 = arith.constant 0 : i32
    %c0_i32_1 = arith.constant 0 : i32
    return %c0_i32, %c0_i32_0 : i32, i32
  }
  func.func @transform_5(%arg0: i32) -> (i32, i32, i32) {
    %c0_i32 = arith.constant 0 : i32
    %c0_i32_0 = arith.constant 0 : i32
    %c0_i32_1 = arith.constant 0 : i32
    %c0_i32_2 = arith.constant 0 : i32
    return %c0_i32, %c0_i32_0, %c0_i32_1 : i32, i32, i32
  }
  func.func @transform_6(%arg0: i32) -> (i32, i32) {
    %c0_i32 = arith.constant 0 : i32
    %c0_i32_0 = arith.constant 0 : i32
    %c0_i32_1 = arith.constant 0 : i32
    return %c0_i32, %c0_i32_0 : i32, i32
  }
  func.func @transform_7(%arg0: i32) -> (i32, i32) {
    %c0_i32 = arith.constant 0 : i32
    %c0_i32_0 = arith.constant 0 : i32
    %c0_i32_1 = arith.constant 0 : i32
    return %c0_i32, %c0_i32_0 : i32, i32
  }
  func.func @transform_8(%arg0: i32) -> (i32, i32) {
    %c0_i32 = arith.constant 0 : i32
    %c0_i32_0 = arith.constant 0 : i32
    %c0_i32_1 = arith.constant 0 : i32
    return %c0_i32, %c0_i32_0 : i32, i32
  }
  func.func @transform_9(%arg0: i32) -> (i32, i32) {
    %c0_i32 = arith.constant 0 : i32
    %c0_i32_0 = arith.constant 0 : i32
    return %arg0, %c0_i32 : i32, i32
  }
}

</mosaic_0001>

<bundles_post_ra>
// kernel: cnn_net_forward.1
= control target key start
LH: loop header
LB: loop body
LE: loop exit
PB: predicated region body
PF: predicated region fallthrough
CT: control target
= control target key end

     0   :  { %14 = vsyncpa [#allocation3], 0  ;;  %s7219_s0 = inlined_call_operand.vmem [shape: bf16[28,16,28], index: 0, kind: input, shape index: {}]   ;;  %s7220_s1 = inlined_call_operand.vmem [shape: bf16[7,28,256], index: 1, kind: input, shape index: {}]   ;;  %s7221_s2 = inlined_call_operand.vmem [shape: f32[1,128], index: 2, kind: input, shape index: {}]   ;;  %s7222_s3 = inlined_call_operand.hbm [shape: bf16[5,128,256], index: 3, kind: input, shape index: {}]   ;;  %s7223_s4 = inlined_call_operand.vmem [shape: f32[1,128], index: 4, kind: input, shape index: {}]   ;;  %s7224_s5 = inlined_call_operand.hbm [shape: bf16[3,128,128], index: 5, kind: input, shape index: {}]   ;;  %s7225_s6 = inlined_call_operand.vmem [shape: f32[1,128], index: 6, kind: input, shape index: {}]   ;;  %s7226_s7 = inlined_call_operand.vmem [shape: bf16[128,128], index: 7, kind: input, shape index: {}]   ;;  %s7227_s8 = inlined_call_operand.vmem [shape: f32[1,128], index: 8, kind: input, shape index: {}]   ;;  %s7228_s9 = inlined_call_operand.vmem [shape: f32[16,128], index: 9, kind: output, shape index: {}]  }
   0x1   :  { %15 = vsyncpa [#allocation5], 0  ;;  %s5911_s30 = smov [#allocation2]   ;;  %s5863_s13 = scalar_lea.hbm %s7222_s3, 10240 }
   0x2   :  { %s27_s10 = sshll.u32 %s5911_s30, 4  ;;  %p5864_p0 = scmp.ne.s32.totalorder %s7222_s3, %s5863_s13  ;;  %s28_s10 = int_to_ptr.vmem [resolvable:$true] %s27_s10 }
   0x3   :  { %p5867_p1 = scmp.lt.u32.totalorder %s5863_s13, %s7222_s3 }
   0x5   :  { %p5869_p2 = pnand %p5867_p1, %p5864_p0 }
   0x7   :  { %5872 = shalt.err (!%p5869_p2)
}
   0x8   :  { %s5873_s18 = scalar_lea.vmem %s28_s10, 10240  ;;  %p5878_p4 = scmp.lt.s32.totalorder %s28_s10, %s28_s10 }
   0x9   :  { %p5874_p3 = scmp.ne.s32.totalorder %s28_s10, %s5873_s18  ;;  %p5879_p5 = scmp.lt.s32.totalorder %s5873_s18, %s5873_s18 }
   0xb   :  { %p5880_p6 = por %p5879_p5, %p5878_p4 }
   0xd   :  { %p5881_p7 = pnand %p5880_p6, %p5874_p3 }
   0xf   :  { %5884 = shalt.err (!%p5881_p7)
}
  0x10   :  { %s5912_s19 = smov 128   ;;  %s5913_s20 = smov 8  }
  0x11   :  { %33 = dma.hbm_to_vmem [thread:$0]  %s7222_s3, 10240, %s28_s10, [#allocation3], %s5912_s19, %s5912_s19, %s5913_s20  }
  0x12   :  { %s5914_s23 = smov [#allocation4]   ;;  %s5885_s27 = scalar_lea.hbm %s7224_s5, 3072 }
  0x13   :  { %s41_s24 = sshll.u32 %s5914_s23, 4  ;;  %p5886_p8 = scmp.ne.s32.totalorder %s7224_s5, %s5885_s27  ;;  %s42_s24 = int_to_ptr.vmem [resolvable:$true] %s41_s24 }
  0x14   :  { %p5889_p9 = scmp.lt.u32.totalorder %s5885_s27, %s7224_s5 }
  0x16   :  { %p5891_p10 = pnand %p5889_p9, %p5886_p8 }
  0x18   :  { %5894 = shalt.err (!%p5891_p10)
}
  0x19   :  { %s5895_s12 = scalar_lea.vmem %s42_s24, 3072  ;;  %p5900_p12 = scmp.lt.s32.totalorder %s42_s24, %s42_s24 }
  0x1a   :  { %p5896_p11 = scmp.ne.s32.totalorder %s42_s24, %s5895_s12  ;;  %p5901_p13 = scmp.lt.s32.totalorder %s5895_s12, %s5895_s12 }
  0x1c   :  { %p5902_p0 = por %p5901_p13, %p5900_p12 }
  0x1e   :  { %p5903_p1 = pnand %p5902_p0, %p5896_p11 }
  0x20   :  { %5906 = shalt.err (!%p5903_p1)
}
  0x21   :  { %s5915_s3 = smov 64   ;;  %s5916_s10 = smov 4  }
  0x22   :  { %47 = dma.hbm_to_vmem [thread:$0]  %s7224_s5, 3072, %s42_s24, [#allocation5], %s5915_s3, %s5915_s3, %s5916_s10  }
  0x23   :  { %5907 = dma.done.wait [#allocation3], 10240  }
  0x24   :  { %5908 = vsyncadd [#allocation3], 4294957056 }
  0x25   :  { %5909 = dma.done.wait [#allocation5], 3072  }
  0x26   :  { %5910 = vsyncadd [#allocation5], 4294964224  ;;  %v5917_v0 = vmov 0   ;;  %v5999_v1 = vld [vmem:[%s7220_s1 + $0x44] ss:$8 sps:$4 sm:$0xff]   ;;  %vm321_vm0 = vcmask 1045504  }
  0x27   :  { %935 = vmatprep.mubr.bf16.mxu0 %v5917_v0  ;;  %360 = vmatprep.mubr.bf16.mxu1 %v5917_v0  ;;  %v6004_v2 = vld [vmem:[%s7220_s1 + $0x40] ss:$8 sps:$4 sm:$0xff]   ;;  %v6010_v3 = vld [vmem:[%s7220_s1 + $0x54] ss:$8 sps:$4 sm:$0x3f]   ;;  %vm254_vm1 = vcmask 228352  }
  0x28   :  { %903 = vmatprep.subr.bf16.mxu0 %v5999_v1  ;;  %v5636_v4 = vld [vmem:[%s7220_s1 + $0x50] ss:$8 sps:$4 sm:$0x3f]   ;;  %v5640_v6 = vld [vmem:[%s7220_s1 + $0x64] ss:$8 sps:$4 sm:$0xff]   ;;  %vm5919_vm2 = vmmov 0  }
  0x29   :  { %904 = vmatpush1.bf16.msra.mxu0 %v6004_v2  ;;  %v6019_v5 = vsel %vm321_vm0, %v5636_v4, 0  ;;  %v6027_v7 = vld [vmem:[%s7219_s0 + $0x10] sm:$0xff]   ;;  %v5638_v8 = vld [vmem:[%s7220_s1 + $0x60] ss:$8 sps:$4 sm:$0xff]   ;;  %v6045_v11 = vld [vmem:[%s7219_s0 + $0x18] sm:$0xff]  }
  0x2a   :  { %4601 = vmatprep.subr.msk.bf16.mxu0 %vm321_vm0, %v6010_v3  ;;  %v5647_v9 = vld [vmem:[%s7220_s1 + $0x74] ss:$8 sps:$4 sm:$0x3f]   ;;  %v5649_v10 = vld [vmem:[%s7220_s1 + $0x70] ss:$8 sps:$4 sm:$0x3f]  }
  0x2b   :  { %v1276_v12 = vsel %vm321_vm0, %v5649_v10, 0  ;;  %v5658_v13 = vld [vmem:[%s7220_s1 + $0x84] ss:$8 sps:$4 sm:$0xff]   ;;  %v5661_v15 = vld [vmem:[%s7220_s1 + $0x20] ss:$8 sps:$4 sm:$0xff]   ;;  %v6096_v22 = vld [vmem:[%s7219_s0 + $0x30] sm:$0xff]  }
  0x2c   :  { %v5659_v14 = vld [vmem:[%s7220_s1 + $0x24] ss:$8 sps:$4 sm:$0xff]   ;;  %v5662_v17 = vld [vmem:[%s7220_s1 + $0x34] ss:$8 sps:$4 sm:$0x3f]  }
  0x2d   :  { %906 = vmatpush1.bf16.msra.mxu0 %v6019_v5  ;;  %v6064_v16 = vld [vmem:[%s7219_s0 + $0x20] sm:$0xff]   ;;  %328 = vmatprep.subr.bf16.mxu1 %v5659_v14  ;;  %v5664_v18 = vld [vmem:[%s7220_s1 + $0x30] ss:$8 sps:$4 sm:$0x3f]   ;;  %v6077_v20 = vld [vmem:[%s7219_s0 + $0x8] sm:$0xff]  }
  0x2e   :  { %1281 = vmatprep.subr.bf16.mxu0 %v5640_v6  ;;  %329 = vmatpush1.bf16.msra.mxu1 %v5661_v15  ;;  %v323_v19 = vsel %vm321_vm0, %v5664_v18, 0  ;;  %v6085_v21 = vld [vmem:[%s7219_s0 + $0x28] sm:$0xff]   ;;  %v6107_v23 = vld [vmem:[%s7219_s0 + $0x38] sm:$0xff]   ;;  %v6118_v24 = vld [vmem:[%s7219_s0 + $0x40] sm:$0xff]  }
  0x2f   :  { %4541 = vmatprep.subr.msk.bf16.mxu1 %vm321_vm0, %v5662_v17  ;;  %v6129_v25 = vld [vmem:[%s7219_s0 + $0x48] sm:$0xff]   ;;  %v6140_v26 = vld [vmem:[%s7219_s0 + $0x50] sm:$0xff]   ;;  %v6151_v27 = vld [vmem:[%s7219_s0 + $0x58] sm:$0xff]  }
  0x30   :  { %4602 = vmatmul.mubr.msk.bf16.vlgmr.msra.gmra.mrb[0].mxu0 %vm254_vm1, %v6027_v7  ;;  %v6162_v28 = vld [vmem:[%s7219_s0 + $0x60] sm:$0xff]   ;;  %v6173_v29 = vld [vmem:[%s7219_s0 + $0x68] sm:$0xff]   ;;  %v6184_v30 = vld [vmem:[%s7219_s0 + $0x70] sm:$0xff]  }
  0x31   :  { %1282 = vmatpush1.bf16.msra.mxu0 %v5638_v8  ;;  %945 = vmatprep.mubr.bf16.mxu0 %v5917_v0  ;;  %v5656_v31 = vld [vmem:[%s7220_s1 + $0x80] ss:$8 sps:$4 sm:$0xff]   ;;  %v5666_v32 = vld [vmem:[%s7220_s1 + $0x94] ss:$8 sps:$4 sm:$0x3f]  }
  0x32   :  { %4633 = vmatprep.subr.msk.bf16.mxu0 %vm321_vm0, %v5647_v9  ;;  %331 = vmatpush1.bf16.msra.mxu1 %v323_v19  ;;  %v5668_v33 = vld [vmem:[%s7220_s1 + $0x90] ss:$8 sps:$4 sm:$0x3f]   ;;  %v6241_v36 = vld [vmem:[%s7219_s0 + $0x80] sm:$0xff]   ;;  %v6252_v37 = vld [vmem:[%s7219_s0 + $0x88] sm:$0xff]  }
  0x33   :  { %v1654_v34 = vsel %vm321_vm0, %v5668_v33, 0  ;;  %v6230_v35 = vld [vmem:[%s7219_s0 + $0x78] sm:$0xff]   ;;  %v5681_v38 = vld [vmem:[%s7220_s1 + $0xa4] ss:$8 sps:$4 sm:$0xff]   ;;  %v6266_v39 = vld [vmem:[%s7219_s0 + $0x90] sm:$0xff]  }
  0x34   :  { %v6277_v40 = vld [vmem:[%s7219_s0 + $0x98] sm:$0xff]   ;;  %v5682_v41 = vld [vmem:[%s7220_s1] ss:$8 sps:$4 sm:$0xff]   ;;  %v5684_v42 = vld [vmem:[%s7220_s1 + $0x4] ss:$8 sps:$4 sm:$0xff]  }
  0x35   :  { %1284 = vmatpush1.bf16.msra.mxu0 %v1276_v12  ;;  %4542 = vmatmul.mubr.msk.bf16.vlgmr.msra.gmra.mrb[0].mxu1 %vm254_vm1, %v6077_v20  ;;  %v6294_v43 = vld [vmem:[%s7219_s0 + $0xa0] sm:$0xff]   ;;  %v5685_v44 = vld [vmem:[%s7220_s1 + $0x14] ss:$8 sps:$4 sm:$0x3f]   ;;  %v6313_v47 = vld [vmem:[%s7219_s0 + $0xa8] sm:$0xff]  }
  0x36   :  { %1659 = vmatprep.subr.bf16.mxu0 %v5658_v13  ;;  %370 = vmatprep.mubr.bf16.mxu1 %v5917_v0  ;;  %v5687_v45 = vld [vmem:[%s7220_s1 + $0x10] ss:$8 sps:$4 sm:$0x3f]   ;;  %v5688_v49 = vld [vmem:[%s7219_s0] sm:$0xff]   ;;  %v6552_v57 = vld [vmem:[%s7219_s0 + $0xc8] sm:$0xff]  }
  0x37   :  { %613 = vmatprep.subr.bf16.mxu1 %v5684_v42  ;;  %v608_v46 = vsel %vm321_vm0, %v5687_v45, 0  ;;  %v6325_v48 = vld [vmem:[%s7219_s0 + $0xb0] sm:$0xff]   ;;  %v6390_v50 = vld [vmem:[%s7219_s0 + $0xb8] sm:$0xff]   ;;  %v6401_v51 = vld [vmem:[%s7219_s0 + $0xc0] sm:$0xff]  }
  0x38   :  { %4603 = vmatmul.mubr.msk.bf16.gmra.mrb[4].mxu0 %vm254_vm1, %v6045_v11  ;;  %614 = vmatpush1.bf16.msra.mxu1 %v5682_v41  ;;  %v5679_v52 = vld [vmem:[%s7220_s1 + $0xa0] ss:$8 sps:$4 sm:$0xff]   ;;  %v5689_v53 = vld [vmem:[%s7220_s1 + $0xb4] ss:$8 sps:$4 sm:$0x3f]  }
  0x39   :  { %955 = vmatprep.mubr.bf16.mxu0 %v5917_v0  ;;  %4569 = vmatprep.subr.msk.bf16.mxu1 %vm321_vm0, %v5685_v44  ;;  %v5691_v54 = vld [vmem:[%s7220_s1 + $0xb0] ss:$8 sps:$4 sm:$0x3f]   ;;  %v5695_v56 = vld [vmem:[%s7220_s1 + $0xc4] ss:$8 sps:$4 sm:$0xff]  }
  0x3a   :  { %v2032_v55 = vsel %vm321_vm0, %v5691_v54, 0  ;;  %v5693_v58 = vld [vmem:[%s7220_s1 + $0xc0] ss:$8 sps:$4 sm:$0xff]   ;;  %v5696_v59 = vld [vmem:[%s7220_s1 + $0xd4] ss:$8 sps:$4 sm:$0x3f]  }
  0x3b   :  { %v5698_v60 = vld [vmem:[%s7220_s1 + $0xd0] ss:$8 sps:$4 sm:$0x3f]  }
  0x3c   :  { %616 = vmatpush1.bf16.msra.mxu1 %v608_v46  ;;  %v2410_v61 = vsel %vm321_vm0, %v5698_v60, 0 }
  0x3d   :  { %4543 = vmatmul.mubr.msk.bf16.gmra.mrb[4].mxu1 %vm254_vm1, %v6027_v7  ;;  %4984 = vmatprep.subr.bf16.mxu1 %v5999_v1 }
  0x3e   :  { %380 = vmatprep.mubr.bf16.mxu1 %v5917_v0 }
  0x40   :  { %4604 = vmatmul.mubr.msk.bf16.gmra.mrb[8].mxu0 %vm254_vm1, %v6064_v16 }
  0x41   :  { %965 = vmatprep.mubr.bf16.mxu0 %v5917_v0 }
  0x45   :  { %4544 = vmatmul.mubr.msk.bf16.gmra.mrb[8].mxu1 %vm254_vm1, %v6045_v11 }
  0x46   :  { %390 = vmatprep.mubr.bf16.mxu1 %v5917_v0 }
  0x48   :  { %4605 = vmatmul.mubr.msk.bf16.gmra.mrb[12].mxu0 %vm254_vm1, %v6085_v21 }
  0x49   :  { %975 = vmatprep.mubr.bf16.mxu0 %v5917_v0 }
  0x4d   :  { %4545 = vmatmul.mubr.msk.bf16.gmra.mrb[12].mxu1 %vm254_vm1, %v6064_v16 }
  0x4e   :  { %400 = vmatprep.mubr.bf16.mxu1 %v5917_v0 }
  0x50   :  { %4606 = vmatmul.mubr.msk.bf16.gmra.mrb[16].mxu0 %vm254_vm1, %v6096_v22 }
  0x51   :  { %985 = vmatprep.mubr.bf16.mxu0 %v5917_v0 }
  0x55   :  { %4546 = vmatmul.mubr.msk.bf16.gmra.mrb[16].mxu1 %vm254_vm1, %v6085_v21 }
  0x56   :  { %410 = vmatprep.mubr.bf16.mxu1 %v5917_v0 }
  0x58   :  { %4607 = vmatmul.mubr.msk.bf16.gmra.mrb[20].mxu0 %vm254_vm1, %v6107_v23 }
  0x59   :  { %995 = vmatprep.mubr.bf16.mxu0 %v5917_v0 }
  0x5d   :  { %4547 = vmatmul.mubr.msk.bf16.gmra.mrb[20].mxu1 %vm254_vm1, %v6096_v22 }
  0x5e   :  { %420 = vmatprep.mubr.bf16.mxu1 %v5917_v0 }
  0x60   :  { %4608 = vmatmul.mubr.msk.bf16.gmra.mrb[24].mxu0 %vm254_vm1, %v6118_v24 }
  0x61   :  { %1005 = vmatprep.mubr.bf16.mxu0 %v5917_v0 }
  0x65   :  { %4548 = vmatmul.mubr.msk.bf16.gmra.mrb[24].mxu1 %vm254_vm1, %v6107_v23 }
  0x66   :  { %430 = vmatprep.mubr.bf16.mxu1 %v5917_v0 }
  0x68   :  { %4609 = vmatmul.mubr.msk.bf16.gmra.mrb[28].mxu0 %vm254_vm1, %v6129_v25 }
  0x69   :  { %1015 = vmatprep.mubr.bf16.mxu0 %v5917_v0 }
  0x6d   :  { %4549 = vmatmul.mubr.msk.bf16.gmra.mrb[28].mxu1 %vm254_vm1, %v6118_v24 }
  0x6e   :  { %440 = vmatprep.mubr.bf16.mxu1 %v5917_v0 }
  0x70   :  { %4610 = vmatmul.mubr.msk.bf16.gmra.mrb[32].mxu0 %vm254_vm1, %v6140_v26 }
  0x71   :  { %1025 = vmatprep.mubr.bf16.mxu0 %v5917_v0 }
  0x75   :  { %4550 = vmatmul.mubr.msk.bf16.gmra.mrb[32].mxu1 %vm254_vm1, %v6129_v25 }
  0x76   :  { %450 = vmatprep.mubr.bf16.mxu1 %v5917_v0 }
  0x78   :  { %4611 = vmatmul.mubr.msk.bf16.gmra.mrb[36].mxu0 %vm254_vm1, %v6151_v27 }
  0x79   :  { %1035 = vmatprep.mubr.bf16.mxu0 %v5917_v0 }
  0x7d   :  { %4551 = vmatmul.mubr.msk.bf16.gmra.mrb[36].mxu1 %vm254_vm1, %v6140_v26 }
  0x7e   :  { %460 = vmatprep.mubr.bf16.mxu1 %v5917_v0 }
  0x80   :  { %4612 = vmatmul.mubr.msk.bf16.gmra.mrb[40].mxu0 %vm254_vm1, %v6162_v28 }
  0x81   :  { %1045 = vmatprep.mubr.bf16.mxu0 %v5917_v0 }
  0x85   :  { %4552 = vmatmul.mubr.msk.bf16.gmra.mrb[40].mxu1 %vm254_vm1, %v6151_v27 }
  0x86   :  { %470 = vmatprep.mubr.bf16.mxu1 %v5917_v0 }
  0x88   :  { %4613 = vmatmul.mubr.msk.bf16.gmra.mrb[44].mxu0 %vm254_vm1, %v6173_v29 }
  0x89   :  { %1055 = vmatprep.mubr.bf16.mxu0 %v5917_v0 }
  0x8d   :  { %4553 = vmatmul.mubr.msk.bf16.gmra.mrb[44].mxu1 %vm254_vm1, %v6162_v28 }
  0x8e   :  { %480 = vmatprep.mubr.bf16.mxu1 %v5917_v0 }
  0x90   :  { %4614 = vmatmul.mubr.msk.bf16.gmra.mrb[48].mxu0 %vm254_vm1, %v6184_v30 }
  0x91   :  { %1313 = vmatprep.mubr.bf16.mxu0 %v5917_v0 }
  0x95   :  { %4554 = vmatmul.mubr.msk.bf16.gmra.mrb[48].mxu1 %vm254_vm1, %v6173_v29 }
  0x96   :  { %490 = vmatprep.mubr.bf16.mxu1 %v5917_v0 }
  0x98   :  { %4634 = vmatmul.mubr.msk.bf16.vlgmr.msra.gmra.mrb[0].mxu0 %vm254_vm1, %v6045_v11 }
  0x99   :  { %1660 = vmatpush1.bf16.msra.mxu0 %v5656_v31  ;;  %1323 = vmatprep.mubr.bf16.mxu0 %v5917_v0 }
  0x9a   :  { %4665 = vmatprep.subr.msk.bf16.mxu0 %vm321_vm0, %v5666_v32 }
  0x9d   :  { %1662 = vmatpush1.bf16.msra.mxu0 %v1654_v34  ;;  %4555 = vmatmul.mubr.msk.bf16.gmra.mrb[52].mxu1 %vm254_vm1, %v6184_v30 }
  0x9e   :  { %500 = vmatprep.mubr.bf16.mxu1 %v5917_v0  ;;  %2037 = vmatprep.subr.bf16.mxu0 %v5681_v38 }
  0xa0   :  { %4635 = vmatmul.mubr.msk.bf16.gmra.mrb[4].mxu0 %vm254_vm1, %v6064_v16 }
  0xa1   :  { %1333 = vmatprep.mubr.bf16.mxu0 %v5917_v0 }
  0xa5   :  { %4556 = vmatmul.mubr.msk.bf16.gmra.mrb[56].mxu1 %vm254_vm1, %v6230_v35 }
  0xa6   :  { %510 = vmatprep.mubr.bf16.mxu1 %v5917_v0 }
  0xa8   :  { %4636 = vmatmul.mubr.msk.bf16.gmra.mrb[8].mxu0 %vm254_vm1, %v6085_v21 }
  0xa9   :  { %1343 = vmatprep.mubr.bf16.mxu0 %v5917_v0 }
  0xad   :  { %4557 = vmatmul.mubr.msk.bf16.gmra.mrb[60].mxu1 %vm254_vm1, %v6241_v36 }
  0xae   :  { %520 = vmatprep.mubr.bf16.mxu1 %v5917_v0 }
  0xb0   :  { %4637 = vmatmul.mubr.msk.bf16.gmra.mrb[12].mxu0 %vm254_vm1, %v6096_v22 }
  0xb1   :  { %1353 = vmatprep.mubr.bf16.mxu0 %v5917_v0 }
  0xb5   :  { %4558 = vmatmul.mubr.msk.bf16.gmra.mrb[64].mxu1 %vm254_vm1, %v6252_v37 }
  0xb6   :  { %530 = vmatprep.mubr.bf16.mxu1 %v5917_v0 }
  0xb8   :  { %4638 = vmatmul.mubr.msk.bf16.gmra.mrb[16].mxu0 %vm254_vm1, %v6107_v23 }
  0xb9   :  { %1363 = vmatprep.mubr.bf16.mxu0 %v5917_v0 }
  0xbd   :  { %4559 = vmatmul.mubr.msk.bf16.gmra.mrb[68].mxu1 %vm254_vm1, %v6266_v39 }
  0xbe   :  { %540 = vmatprep.mubr.bf16.mxu1 %v5917_v0 }
  0xc0   :  { %4639 = vmatmul.mubr.msk.bf16.gmra.mrb[20].mxu0 %vm254_vm1, %v6118_v24 }
  0xc1   :  { %1373 = vmatprep.mubr.bf16.mxu0 %v5917_v0 }
  0xc5   :  { %4560 = vmatmul.mubr.msk.bf16.gmra.mrb[72].mxu1 %vm254_vm1, %v6277_v40 }
  0xc6   :  { %550 = vmatprep.mubr.bf16.mxu1 %v5917_v0 }
  0xc8   :  { %4640 = vmatmul.mubr.msk.bf16.gmra.mrb[24].mxu0 %vm254_vm1, %v6129_v25 }
  0xc9   :  { %1383 = vmatprep.mubr.bf16.mxu0 %v5917_v0 }
  0xcd   :  { %4561 = vmatmul.mubr.msk.bf16.gmra.mrb[76].mxu1 %vm254_vm1, %v6294_v43 }
  0xce   :  { %560 = vmatprep.mubr.bf16.mxu1 %v5917_v0 }
  0xd0   :  { %4641 = vmatmul.mubr.msk.bf16.gmra.mrb[28].mxu0 %vm254_vm1, %v6140_v26 }
  0xd1   :  { %1393 = vmatprep.mubr.bf16.mxu0 %v5917_v0 }
  0xd5   :  { %4562 = vmatmul.mubr.msk.bf16.gmra.mrb[80].mxu1 %vm254_vm1, %v6313_v47 }
  0xd6   :  { %570 = vmatprep.mubr.bf16.mxu1 %v5917_v0 }
  0xd8   :  { %4642 = vmatmul.mubr.msk.bf16.gmra.mrb[32].mxu0 %vm254_vm1, %v6151_v27 }
  0xd9   :  { %1403 = vmatprep.mubr.bf16.mxu0 %v5917_v0 }
  0xdd   :  { %4563 = vmatmul.mubr.msk.bf16.gmra.mrb[84].mxu1 %vm254_vm1, %v6325_v48 }
  0xde   :  { %645 = vmatprep.mubr.bf16.mxu1 %v5917_v0 }
  0xe0   :  { %4643 = vmatmul.mubr.msk.bf16.gmra.mrb[36].mxu0 %vm254_vm1, %v6162_v28 }
  0xe1   :  { %1413 = vmatprep.mubr.bf16.mxu0 %v5917_v0 }
  0xe5   :  { %4570 = vmatmul.mubr.msk.bf16.vlgmr.msra.gmra.mrb[0].mxu1 %vm254_vm1, %v5688_v49 }
  0xe6   :  { %655 = vmatprep.mubr.bf16.mxu1 %v5917_v0  ;;  %4986 = vmatpush1.bf16.msra.mxu1 %v6004_v2 }
  0xe7   :  { %4985 = vmatprep.subr.msk.bf16.mxu1 %vm321_vm0, %v6010_v3 }
  0xe8   :  { %4644 = vmatmul.mubr.msk.bf16.gmra.mrb[40].mxu0 %vm254_vm1, %v6173_v29 }
  0xe9   :  { %1423 = vmatprep.mubr.bf16.mxu0 %v5917_v0 }
  0xea   :  { %4987 = vmatpush1.bf16.msra.mxu1 %v6019_v5 }
  0xed   :  { %4571 = vmatmul.mubr.msk.bf16.gmra.mrb[4].mxu1 %vm254_vm1, %v6077_v20 }
  0xee   :  { %665 = vmatprep.mubr.bf16.mxu1 %v5917_v0 }
  0xf0   :  { %4645 = vmatmul.mubr.msk.bf16.gmra.mrb[44].mxu0 %vm254_vm1, %v6184_v30 }
  0xf1   :  { %1433 = vmatprep.mubr.bf16.mxu0 %v5917_v0 }
  0xf5   :  { %4572 = vmatmul.mubr.msk.bf16.gmra.mrb[8].mxu1 %vm254_vm1, %v6027_v7 }
  0xf6   :  { %675 = vmatprep.mubr.bf16.mxu1 %v5917_v0 }
  0xf8   :  { %4646 = vmatmul.mubr.msk.bf16.gmra.mrb[48].mxu0 %vm254_vm1, %v6230_v35 }
  0xf9   :  { %1443 = vmatprep.mubr.bf16.mxu0 %v5917_v0 }
  0xfd   :  { %4573 = vmatmul.mubr.msk.bf16.gmra.mrb[12].mxu1 %vm254_vm1, %v6045_v11 }
  0xfe   :  { %685 = vmatprep.mubr.bf16.mxu1 %v5917_v0 }
 0x100   :  { %4647 = vmatmul.mubr.msk.bf16.gmra.mrb[52].mxu0 %vm254_vm1, %v6241_v36 }
 0x101   :  { %1453 = vmatprep.mubr.bf16.mxu0 %v5917_v0 }
 0x105   :  { %4574 = vmatmul.mubr.msk.bf16.gmra.mrb[16].mxu1 %vm254_vm1, %v6064_v16 }
 0x106   :  { %695 = vmatprep.mubr.bf16.mxu1 %v5917_v0 }
 0x108   :  { %4648 = vmatmul.mubr.msk.bf16.gmra.mrb[56].mxu0 %vm254_vm1, %v6252_v37 }
 0x109   :  { %1463 = vmatprep.mubr.bf16.mxu0 %v5917_v0 }
 0x10d   :  { %4575 = vmatmul.mubr.msk.bf16.gmra.mrb[20].mxu1 %vm254_vm1, %v6085_v21 }
 0x10e   :  { %705 = vmatprep.mubr.bf16.mxu1 %v5917_v0 }
 0x110   :  { %4649 = vmatmul.mubr.msk.bf16.gmra.mrb[60].mxu0 %vm254_vm1, %v6266_v39 }
 0x111   :  { %1473 = vmatprep.mubr.bf16.mxu0 %v5917_v0 }
 0x115   :  { %4576 = vmatmul.mubr.msk.bf16.gmra.mrb[24].mxu1 %vm254_vm1, %v6096_v22 }
 0x116   :  { %715 = vmatprep.mubr.bf16.mxu1 %v5917_v0 }
 0x118   :  { %4650 = vmatmul.mubr.msk.bf16.gmra.mrb[64].mxu0 %vm254_vm1, %v6277_v40 }
 0x119   :  { %1483 = vmatprep.mubr.bf16.mxu0 %v5917_v0 }
 0x11d   :  { %4577 = vmatmul.mubr.msk.bf16.gmra.mrb[28].mxu1 %vm254_vm1, %v6107_v23 }
 0x11e   :  { %725 = vmatprep.mubr.bf16.mxu1 %v5917_v0 }
 0x120   :  { %4651 = vmatmul.mubr.msk.bf16.gmra.mrb[68].mxu0 %vm254_vm1, %v6294_v43 }
 0x121   :  { %1493 = vmatprep.mubr.bf16.mxu0 %v5917_v0 }
 0x125   :  { %4578 = vmatmul.mubr.msk.bf16.gmra.mrb[32].mxu1 %vm254_vm1, %v6118_v24 }
 0x126   :  { %735 = vmatprep.mubr.bf16.mxu1 %v5917_v0 }
 0x128   :  { %4652 = vmatmul.mubr.msk.bf16.gmra.mrb[72].mxu0 %vm254_vm1, %v6313_v47 }
 0x129   :  { %1503 = vmatprep.mubr.bf16.mxu0 %v5917_v0 }
 0x12d   :  { %4579 = vmatmul.mubr.msk.bf16.gmra.mrb[36].mxu1 %vm254_vm1, %v6129_v25 }
 0x12e   :  { %745 = vmatprep.mubr.bf16.mxu1 %v5917_v0 }
 0x130   :  { %4653 = vmatmul.mubr.msk.bf16.gmra.mrb[76].mxu0 %vm254_vm1, %v6325_v48 }
 0x131   :  { %1513 = vmatprep.mubr.bf16.mxu0 %v5917_v0 }
 0x135   :  { %4580 = vmatmul.mubr.msk.bf16.gmra.mrb[40].mxu1 %vm254_vm1, %v6140_v26 }
 0x136   :  { %755 = vmatprep.mubr.bf16.mxu1 %v5917_v0 }
 0x138   :  { %4654 = vmatmul.mubr.msk.bf16.gmra.mrb[80].mxu0 %vm254_vm1, %v6390_v50 }
 0x139   :  { %1523 = vmatprep.mubr.bf16.mxu0 %v5917_v0 }
 0x13d   :  { %4581 = vmatmul.mubr.msk.bf16.gmra.mrb[44].mxu1 %vm254_vm1, %v6151_v27 }
 0x13e   :  { %765 = vmatprep.mubr.bf16.mxu1 %v5917_v0 }
 0x140   :  { %4655 = vmatmul.mubr.msk.bf16.gmra.mrb[84].mxu0 %vm254_vm1, %v6401_v51 }
 0x141   :  { %1691 = vmatprep.mubr.bf16.mxu0 %v5917_v0 }
 0x145   :  { %4582 = vmatmul.mubr.msk.bf16.gmra.mrb[48].mxu1 %vm254_vm1, %v6162_v28 }
 0x146   :  { %775 = vmatprep.mubr.bf16.mxu1 %v5917_v0 }
 0x148   :  { %4666 = vmatmul.mubr.msk.bf16.vlgmr.msra.gmra.mrb[0].mxu0 %vm254_vm1, %v6064_v16 }
 0x149   :  { %2038 = vmatpush1.bf16.msra.mxu0 %v5679_v52  ;;  %1701 = vmatprep.mubr.bf16.mxu0 %v5917_v0 }
 0x14a   :  { %4697 = vmatprep.subr.msk.bf16.mxu0 %vm321_vm0, %v5689_v53 }
 0x14d   :  { %2040 = vmatpush1.bf16.msra.mxu0 %v2032_v55  ;;  %4583 = vmatmul.mubr.msk.bf16.gmra.mrb[52].mxu1 %vm254_vm1, %v6173_v29 }
 0x14e   :  { %785 = vmatprep.mubr.bf16.mxu1 %v5917_v0  ;;  %2415 = vmatprep.subr.bf16.mxu0 %v5695_v56 }
 0x150   :  { %4667 = vmatmul.mubr.msk.bf16.gmra.mrb[4].mxu0 %vm254_vm1, %v6085_v21 }
 0x151   :  { %1711 = vmatprep.mubr.bf16.mxu0 %v5917_v0 }
 0x155   :  { %4584 = vmatmul.mubr.msk.bf16.gmra.mrb[56].mxu1 %vm254_vm1, %v6184_v30 }
 0x156   :  { %795 = vmatprep.mubr.bf16.mxu1 %v5917_v0 }
 0x158   :  { %4668 = vmatmul.mubr.msk.bf16.gmra.mrb[8].mxu0 %vm254_vm1, %v6096_v22 }
 0x159   :  { %1721 = vmatprep.mubr.bf16.mxu0 %v5917_v0 }
 0x15d   :  { %4585 = vmatmul.mubr.msk.bf16.gmra.mrb[60].mxu1 %vm254_vm1, %v6230_v35 }
 0x15e   :  { %805 = vmatprep.mubr.bf16.mxu1 %v5917_v0 }
 0x160   :  { %4669 = vmatmul.mubr.msk.bf16.gmra.mrb[12].mxu0 %vm254_vm1, %v6107_v23 }
 0x161   :  { %1731 = vmatprep.mubr.bf16.mxu0 %v5917_v0 }
 0x165   :  { %4586 = vmatmul.mubr.msk.bf16.gmra.mrb[64].mxu1 %vm254_vm1, %v6241_v36 }
 0x166   :  { %815 = vmatprep.mubr.bf16.mxu1 %v5917_v0 }
 0x168   :  { %4670 = vmatmul.mubr.msk.bf16.gmra.mrb[16].mxu0 %vm254_vm1, %v6118_v24 }
 0x169   :  { %1741 = vmatprep.mubr.bf16.mxu0 %v5917_v0 }
 0x16d   :  { %4587 = vmatmul.mubr.msk.bf16.gmra.mrb[68].mxu1 %vm254_vm1, %v6252_v37 }
 0x16e   :  { %825 = vmatprep.mubr.bf16.mxu1 %v5917_v0 }
 0x170   :  { %4671 = vmatmul.mubr.msk.bf16.gmra.mrb[20].mxu0 %vm254_vm1, %v6129_v25 }
 0x171   :  { %1751 = vmatprep.mubr.bf16.mxu0 %v5917_v0 }
 0x175   :  { %4588 = vmatmul.mubr.msk.bf16.gmra.mrb[72].mxu1 %vm254_vm1, %v6266_v39 }
 0x176   :  { %835 = vmatprep.mubr.bf16.mxu1 %v5917_v0 }
 0x178   :  { %4672 = vmatmul.mubr.msk.bf16.gmra.mrb[24].mxu0 %vm254_vm1, %v6140_v26 }
 0x179   :  { %1761 = vmatprep.mubr.bf16.mxu0 %v5917_v0 }
 0x17d   :  { %4589 = vmatmul.mubr.msk.bf16.gmra.mrb[76].mxu1 %vm254_vm1, %v6277_v40 }
 0x17e   :  { %845 = vmatprep.mubr.bf16.mxu1 %v5917_v0 }
 0x180   :  { %4673 = vmatmul.mubr.msk.bf16.gmra.mrb[28].mxu0 %vm254_vm1, %v6151_v27 }
 0x181   :  { %1771 = vmatprep.mubr.bf16.mxu0 %v5917_v0 }
 0x185   :  { %4590 = vmatmul.mubr.msk.bf16.gmra.mrb[80].mxu1 %vm254_vm1, %v6294_v43 }
 0x186   :  { %855 = vmatprep.mubr.bf16.mxu1 %v5917_v0 }
 0x188   :  { %4674 = vmatmul.mubr.msk.bf16.gmra.mrb[32].mxu0 %vm254_vm1, %v6162_v28 }
 0x189   :  { %1781 = vmatprep.mubr.bf16.mxu0 %v5917_v0 }
 0x18d   :  { %4591 = vmatmul.mubr.msk.bf16.gmra.mrb[84].mxu1 %vm254_vm1, %v6313_v47 }
 0x18e   :  { %1065 = vmatprep.mubr.bf16.mxu1 %v5917_v0 }
 0x190   :  { %4675 = vmatmul.mubr.msk.bf16.gmra.mrb[36].mxu0 %vm254_vm1, %v6173_v29 }
 0x191   :  { %1791 = vmatprep.mubr.bf16.mxu0 %v5917_v0 }
 0x195   :  { %4615 = vmatmul.mubr.msk.bf16.vlgmr.msra.gmra.mrb[52].mxu1 %vm254_vm1, %v6230_v35 }
 0x196   :  { %1075 = vmatprep.mubr.bf16.mxu1 %v5917_v0 }
 0x198   :  { %4676 = vmatmul.mubr.msk.bf16.gmra.mrb[40].mxu0 %vm254_vm1, %v6184_v30 }
 0x199   :  { %1801 = vmatprep.mubr.bf16.mxu0 %v5917_v0 }
 0x19d   :  { %4616 = vmatmul.mubr.msk.bf16.gmra.mrb[56].mxu1 %vm254_vm1, %v6241_v36 }
 0x19e   :  { %1085 = vmatprep.mubr.bf16.mxu1 %v5917_v0 }
 0x1a0   :  { %4677 = vmatmul.mubr.msk.bf16.gmra.mrb[44].mxu0 %vm254_vm1, %v6230_v35 }
 0x1a1   :  { %1811 = vmatprep.mubr.bf16.mxu0 %v5917_v0 }
 0x1a5   :  { %4617 = vmatmul.mubr.msk.bf16.gmra.mrb[60].mxu1 %vm254_vm1, %v6252_v37 }
 0x1a6   :  { %1095 = vmatprep.mubr.bf16.mxu1 %v5917_v0 }
 0x1a8   :  { %4678 = vmatmul.mubr.msk.bf16.gmra.mrb[48].mxu0 %vm254_vm1, %v6241_v36 }
 0x1a9   :  { %1821 = vmatprep.mubr.bf16.mxu0 %v5917_v0 }
 0x1ad   :  { %4618 = vmatmul.mubr.msk.bf16.gmra.mrb[64].mxu1 %vm254_vm1, %v6266_v39 }
 0x1ae   :  { %1105 = vmatprep.mubr.bf16.mxu1 %v5917_v0 }
 0x1b0   :  { %4679 = vmatmul.mubr.msk.bf16.gmra.mrb[52].mxu0 %vm254_vm1, %v6252_v37 }
 0x1b1   :  { %1831 = vmatprep.mubr.bf16.mxu0 %v5917_v0 }
 0x1b5   :  { %4619 = vmatmul.mubr.msk.bf16.gmra.mrb[68].mxu1 %vm254_vm1, %v6277_v40 }
 0x1b6   :  { %1115 = vmatprep.mubr.bf16.mxu1 %v5917_v0 }
 0x1b8   :  { %4680 = vmatmul.mubr.msk.bf16.gmra.mrb[56].mxu0 %vm254_vm1, %v6266_v39  ;;  %v6573_v62 = vpop.f32.mrb[0].mxu1 }
 0x1b9   :  { %1841 = vmatprep.mubr.bf16.mxu0 %v5917_v0  ;;  %v6576_v63 = vpop.f32.mrb[1].mxu1 }
 0x1ba   :  { %v6578_v1 = vpop.f32.mrb[2].mxu1 }
 0x1bb   :  { %v6580_v2 = vpop.f32.mrb[3].mxu1 }
 0x1bd   :  { %4620 = vmatmul.mubr.msk.bf16.gmra.mrb[72].mxu1 %vm254_vm1, %v6294_v43 }
 0x1be   :  { %1125 = vmatprep.mubr.bf16.mxu1 %v5917_v0 }
 0x1c0   :  { %4681 = vmatmul.mubr.msk.bf16.gmra.mrb[60].mxu0 %vm254_vm1, %v6277_v40  ;;  %v6584_v3 = vpop.f32.mrb[4].mxu1 }
 0x1c1   :  { %1851 = vmatprep.mubr.bf16.mxu0 %v5917_v0  ;;  %v6587_v4 = vpop.f32.mrb[5].mxu1 }
 0x1c2   :  { %v6589_v5 = vpop.f32.mrb[6].mxu1 }
 0x1c3   :  { %v6591_v6 = vpop.f32.mrb[7].mxu1 }
 0x1c5   :  { %4621 = vmatmul.mubr.msk.bf16.gmra.mrb[76].mxu1 %vm254_vm1, %v6313_v47 }
 0x1c6   :  { %1135 = vmatprep.mubr.bf16.mxu1 %v5917_v0 }
 0x1c8   :  { %4682 = vmatmul.mubr.msk.bf16.gmra.mrb[64].mxu0 %vm254_vm1, %v6294_v43  ;;  %v6595_v7 = vpop.f32.mrb[8].mxu1 }
 0x1c9   :  { %1861 = vmatprep.mubr.bf16.mxu0 %v5917_v0  ;;  %v6598_v8 = vpop.f32.mrb[9].mxu1 }
 0x1ca   :  { %v6600_v9 = vpop.f32.mrb[10].mxu1 }
 0x1cb   :  { %v6602_v10 = vpop.f32.mrb[11].mxu1 }
 0x1cd   :  { %4622 = vmatmul.mubr.msk.bf16.gmra.mrb[80].mxu1 %vm254_vm1, %v6325_v48 }
 0x1ce   :  { %1145 = vmatprep.mubr.bf16.mxu1 %v5917_v0 }
 0x1d0   :  { %4683 = vmatmul.mubr.msk.bf16.gmra.mrb[68].mxu0 %vm254_vm1, %v6313_v47  ;;  %v6606_v11 = vpop.f32.mrb[12].mxu1 }
 0x1d1   :  { %1871 = vmatprep.mubr.bf16.mxu0 %v5917_v0  ;;  %v6609_v12 = vpop.f32.mrb[13].mxu1 }
 0x1d2   :  { %v6611_v13 = vpop.f32.mrb[14].mxu1 }
 0x1d3   :  { %v6613_v14 = vpop.f32.mrb[15].mxu1 }
 0x1d5   :  { %4623 = vmatmul.mubr.msk.bf16.gmra.mrb[84].mxu1 %vm254_vm1, %v6390_v50 }
 0x1d6   :  { %3073 = vmatprep.mubr.bf16.mxu1 %v5917_v0 }
 0x1d8   :  { %4684 = vmatmul.mubr.msk.bf16.gmra.mrb[72].mxu0 %vm254_vm1, %v6325_v48  ;;  %v6617_v15 = vpop.f32.mrb[16].mxu1 }
 0x1d9   :  { %1881 = vmatprep.mubr.bf16.mxu0 %v5917_v0  ;;  %v6620_v16 = vpop.f32.mrb[17].mxu1 }
 0x1da   :  { %v6622_v17 = vpop.f32.mrb[18].mxu1 }
 0x1db   :  { %v6624_v18 = vpop.f32.mrb[19].mxu1 }
 0x1e0   :  { %4685 = vmatmul.mubr.msk.bf16.gmra.mrb[76].mxu0 %vm254_vm1, %v6390_v50  ;;  %v6628_v19 = vpop.f32.mrb[20].mxu1 }
 0x1e1   :  { %1891 = vmatprep.mubr.bf16.mxu0 %v5917_v0  ;;  %v6631_v20 = vpop.f32.mrb[21].mxu1 }
 0x1e8   :  { %4686 = vmatmul.mubr.msk.bf16.gmra.mrb[80].mxu0 %vm254_vm1, %v6401_v51 }
 0x1e9   :  { %1901 = vmatprep.mubr.bf16.mxu0 %v5917_v0 }
 0x1f0   :  { %4687 = vmatmul.mubr.msk.bf16.gmra.mrb[84].mxu0 %vm254_vm1, %v6552_v57 }
 0x1f1   :  { %2069 = vmatprep.mubr.bf16.mxu0 %v5917_v0 }
 0x1f8   :  { %4698 = vmatmul.mubr.msk.bf16.vlgmr.msra.gmra.mrb[0].mxu0 %vm254_vm1, %v6085_v21  ;;  %v6633_v21 = vpop.f32.mrb[22].mxu1 }
 0x1f9   :  { %2416 = vmatpush1.bf16.msra.mxu0 %v5693_v58  ;;  %2079 = vmatprep.mubr.bf16.mxu0 %v5917_v0 }
 0x1fa   :  { %4729 = vmatprep.subr.msk.bf16.mxu0 %vm321_vm0, %v5696_v59 }
 0x1fd   :  { %2418 = vmatpush1.bf16.msra.mxu0 %v2410_v61 }
 0x200   :  { %4699 = vmatmul.mubr.msk.bf16.gmra.mrb[4].mxu0 %vm254_vm1, %v6096_v22  ;;  %v6635_v22 = vpop.f32.mrb[23].mxu1 }
 0x201   :  { %2089 = vmatprep.mubr.bf16.mxu0 %v5917_v0 }
 0x208   :  { %4700 = vmatmul.mubr.msk.bf16.gmra.mrb[8].mxu0 %vm254_vm1, %v6107_v23  ;;  %v6639_v23 = vpop.f32.mrb[24].mxu1 }
 0x209   :  { %2099 = vmatprep.mubr.bf16.mxu0 %v5917_v0  ;;  %v6642_v31 = vpop.f32.mrb[25].mxu1 }
 0x20a   :  { %v6644_v32 = vpop.f32.mrb[26].mxu1 }
 0x20b   :  { %v6646_v33 = vpop.f32.mrb[27].mxu1 }
 0x20c   :  { %v6650_v34 = vpop.f32.mrb[28].mxu1 }
 0x20d   :  { %v6653_v38 = vpop.f32.mrb[29].mxu1 }
 0x20e   :  { %v6655_v41 = vpop.f32.mrb[30].mxu1 }
 0x20f   :  { %v6657_v42 = vpop.f32.mrb[31].mxu1 }
 0x210   :  { %4701 = vmatmul.mubr.msk.bf16.gmra.mrb[12].mxu0 %vm254_vm1, %v6118_v24  ;;  %v6661_v44 = vpop.f32.mrb[32].mxu1 }
 0x211   :  { %2109 = vmatprep.mubr.bf16.mxu0 %v5917_v0  ;;  %v6664_v45 = vpop.f32.mrb[33].mxu1 }
 0x212   :  { %v6666_v46 = vpop.f32.mrb[34].mxu1 }
 0x213   :  { %v6668_v49 = vpop.f32.mrb[35].mxu1 }
 0x214   :  { %v6672_v52 = vpop.f32.mrb[36].mxu1 }
 0x215   :  { %7229 = vst [vmem:[#allocation8_spill] sm:$0xff] %v6672_v52  ;;  %v6675_v53 = vpop.f32.mrb[37].mxu1 }
 0x216   :  { %7230 = vst [vmem:[#allocation9_spill] sm:$0xff] %v6675_v53  ;;  %v6677_v54 = vpop.f32.mrb[38].mxu1 }
 0x217   :  { %7231 = vst [vmem:[#allocation10_spill] sm:$0xff] %v6677_v54  ;;  %v6679_v55 = vpop.f32.mrb[39].mxu1 }
 0x218   :  { %4702 = vmatmul.mubr.msk.bf16.gmra.mrb[16].mxu0 %vm254_vm1, %v6129_v25  ;;  %7232 = vst [vmem:[#allocation11_spill] sm:$0xff] %v6679_v55  ;;  %v6683_v56 = vpop.f32.mrb[40].mxu1 }
 0x219   :  { %2119 = vmatprep.mubr.bf16.mxu0 %v5917_v0  ;;  %7233 = vst [vmem:[#allocation12_spill] sm:$0xff] %v6683_v56  ;;  %v6686_v58 = vpop.f32.mrb[41].mxu1 }
 0x21a   :  { %7234 = vst [vmem:[#allocation13_spill] sm:$0xff] %v6686_v58  ;;  %v6688_v59 = vpop.f32.mrb[42].mxu1 }
 0x21b   :  { %7235 = vst [vmem:[#allocation14_spill] sm:$0xff] %v6688_v59  ;;  %v6690_v60 = vpop.f32.mrb[43].mxu1 }
 0x21c   :  { %7236 = vst [vmem:[#allocation15_spill] sm:$0xff] %v6690_v60  ;;  %v6694_v61 = vpop.f32.mrb[44].mxu1 }
 0x21d   :  { %7237 = vst [vmem:[#allocation16_spill] sm:$0xff] %v6694_v61  ;;  %v6697_v55 = vpop.f32.mrb[45].mxu1 }
 0x21e   :  { %7238 = vst [vmem:[#allocation17_spill] sm:$0xff] %v6697_v55  ;;  %v6699_v54 = vpop.f32.mrb[46].mxu1 }
 0x21f   :  { %7239 = vst [vmem:[#allocation18_spill] sm:$0xff] %v6699_v54  ;;  %v6701_v56 = vpop.f32.mrb[47].mxu1 }
 0x220   :  { %4703 = vmatmul.mubr.msk.bf16.gmra.mrb[20].mxu0 %vm254_vm1, %v6140_v26  ;;  %7240 = vst [vmem:[#allocation19_spill] sm:$0xff] %v6701_v56  ;;  %v6705_v58 = vpop.f32.mrb[48].mxu1 }
 0x221   :  { %2129 = vmatprep.mubr.bf16.mxu0 %v5917_v0  ;;  %7241 = vst [vmem:[#allocation20_spill] sm:$0xff] %v6705_v58  ;;  %v6708_v60 = vpop.f32.mrb[49].mxu1 }
 0x222   :  { %7242 = vst [vmem:[#allocation21_spill] sm:$0xff] %v6708_v60  ;;  %v6710_v59 = vpop.f32.mrb[50].mxu1 }
 0x223   :  { %7243 = vst [vmem:[#allocation22_spill] sm:$0xff] %v6710_v59  ;;  %v6712_v61 = vpop.f32.mrb[51].mxu1 }
 0x224   :  { %7244 = vst [vmem:[#allocation23_spill] sm:$0xff] %v6712_v61 }
 0x228   :  { %4704 = vmatmul.mubr.msk.bf16.gmra.mrb[24].mxu0 %vm254_vm1, %v6151_v27 }
 0x229   :  { %2139 = vmatprep.mubr.bf16.mxu0 %v5917_v0 }
 0x230   :  { %4705 = vmatmul.mubr.msk.bf16.gmra.mrb[28].mxu0 %vm254_vm1, %v6162_v28 }
 0x231   :  { %2149 = vmatprep.mubr.bf16.mxu0 %v5917_v0 }
 0x238   :  { %4706 = vmatmul.mubr.msk.bf16.gmra.mrb[32].mxu0 %vm254_vm1, %v6173_v29 }
 0x239   :  { %2159 = vmatprep.mubr.bf16.mxu0 %v5917_v0 }
 0x240   :  { %4707 = vmatmul.mubr.msk.bf16.gmra.mrb[36].mxu0 %vm254_vm1, %v6184_v30 }
 0x241   :  { %2169 = vmatprep.mubr.bf16.mxu0 %v5917_v0 }
 0x248   :  { %4708 = vmatmul.mubr.msk.bf16.gmra.mrb[40].mxu0 %vm254_vm1, %v6230_v35 }
 0x249   :  { %2179 = vmatprep.mubr.bf16.mxu0 %v5917_v0 }
 0x250   :  { %4709 = vmatmul.mubr.msk.bf16.gmra.mrb[44].mxu0 %vm254_vm1, %v6241_v36 }
 0x251   :  { %2189 = vmatprep.mubr.bf16.mxu0 %v5917_v0 }
 0x258   :  { %4710 = vmatmul.mubr.msk.bf16.gmra.mrb[48].mxu0 %vm254_vm1, %v6252_v37 }
 0x259   :  { %2199 = vmatprep.mubr.bf16.mxu0 %v5917_v0 }
 0x260   :  { %4711 = vmatmul.mubr.msk.bf16.gmra.mrb[52].mxu0 %vm254_vm1, %v6266_v39 }
 0x261   :  { %2209 = vmatprep.mubr.bf16.mxu0 %v5917_v0 }
 0x268   :  { %4712 = vmatmul.mubr.msk.bf16.gmra.mrb[56].mxu0 %vm254_vm1, %v6277_v40  ;;  %v6722_v58 = vpop.f32.mrb[52].mxu1 }
 0x269   :  { %2219 = vmatprep.mubr.bf16.mxu0 %v5917_v0  ;;  %7245 = vst [vmem:[#allocation24_spill] sm:$0xff] %v6722_v58  ;;  %v6725_v59 = vpop.f32.mrb[53].mxu1 }
 0x26a   :  { %7246 = vst [vmem:[#allocation25_spill] sm:$0xff] %v6725_v59  ;;  %v6727_v61 = vpop.f32.mrb[54].mxu1 }
 0x26b   :  { %7247 = vst [vmem:[#allocation26_spill] sm:$0xff] %v6727_v61  ;;  %v6729_v60 = vpop.f32.mrb[55].mxu1 }
 0x26c   :  { %7248 = vst [vmem:[#allocation27_spill] sm:$0xff] %v6729_v60 }
 0x270   :  { %4713 = vmatmul.mubr.msk.bf16.gmra.mrb[60].mxu0 %vm254_vm1, %v6294_v43  ;;  %v6733_v56 = vpop.f32.mrb[56].mxu1 }
 0x271   :  { %2229 = vmatprep.mubr.bf16.mxu0 %v5917_v0  ;;  %7249 = vst [vmem:[#allocation28_spill] sm:$0xff] %v6733_v56  ;;  %v6736_v54 = vpop.f32.mrb[57].mxu1 }
 0x272   :  { %7250 = vst [vmem:[#allocation29_spill] sm:$0xff] %v6736_v54  ;;  %v6738_v55 = vpop.f32.mrb[58].mxu1 }
 0x273   :  { %7251 = vst [vmem:[#allocation30_spill] sm:$0xff] %v6738_v55  ;;  %v6740_v58 = vpop.f32.mrb[59].mxu1 }
 0x274   :  { %7252 = vst [vmem:[#allocation31_spill] sm:$0xff] %v6740_v58 }
 0x278   :  { %4714 = vmatmul.mubr.msk.bf16.gmra.mrb[64].mxu0 %vm254_vm1, %v6313_v47  ;;  %v6744_v59 = vpop.f32.mrb[60].mxu1 }
 0x279   :  { %2239 = vmatprep.mubr.bf16.mxu0 %v5917_v0  ;;  %7253 = vst [vmem:[#allocation32_spill] sm:$0xff] %v6744_v59  ;;  %v6747_v60 = vpop.f32.mrb[61].mxu1 }
 0x27a   :  { %7254 = vst [vmem:[#allocation33_spill] sm:$0xff] %v6747_v60  ;;  %v6749_v61 = vpop.f32.mrb[62].mxu1 }
 0x27b   :  { %7255 = vst [vmem:[#allocation34_spill] sm:$0xff] %v6749_v61  ;;  %v6751_v56 = vpop.f32.mrb[63].mxu1 }
 0x27c   :  { %7256 = vst [vmem:[#allocation35_spill] sm:$0xff] %v6751_v56 }
 0x280   :  { %4715 = vmatmul.mubr.msk.bf16.gmra.mrb[68].mxu0 %vm254_vm1, %v6325_v48  ;;  %v6755_v54 = vpop.f32.mrb[64].mxu1 }
 0x281   :  { %2249 = vmatprep.mubr.bf16.mxu0 %v5917_v0  ;;  %7257 = vst [vmem:[#allocation36_spill] sm:$0xff] %v6755_v54  ;;  %v6758_v58 = vpop.f32.mrb[65].mxu1 }
 0x282   :  { %7258 = vst [vmem:[#allocation37_spill] sm:$0xff] %v6758_v58  ;;  %v6760_v55 = vpop.f32.mrb[66].mxu1  ;;  %v6778_v58 = vld [vmem:[%s7219_s0 + $0xd0] sm:$0xff]  }
 0x283   :  { %7259 = vst [vmem:[#allocation38_spill] sm:$0xff] %v6760_v55  ;;  %v6762_v59 = vpop.f32.mrb[67].mxu1 }
 0x284   :  { %7260 = vst [vmem:[#allocation39_spill] sm:$0xff] %v6762_v59 }
 0x288   :  { %4716 = vmatmul.mubr.msk.bf16.gmra.mrb[72].mxu0 %vm254_vm1, %v6390_v50  ;;  %v6766_v60 = vpop.f32.mrb[68].mxu1 }
 0x289   :  { %2259 = vmatprep.mubr.bf16.mxu0 %v5917_v0  ;;  %7261 = vst [vmem:[#allocation40_spill] sm:$0xff] %v6766_v60  ;;  %v6769_v56 = vpop.f32.mrb[69].mxu1 }
 0x28a   :  { %7262 = vst [vmem:[#allocation41_spill] sm:$0xff] %v6769_v56  ;;  %v6771_v61 = vpop.f32.mrb[70].mxu1 }
 0x28b   :  { %7263 = vst [vmem:[#allocation42_spill] sm:$0xff] %v6771_v61  ;;  %v6773_v54 = vpop.f32.mrb[71].mxu1 }
 0x28c   :  { %7264 = vst [vmem:[#allocation43_spill] sm:$0xff] %v6773_v54  ;;  %v5861_v54 = vld [vmem:[%s7219_s0 + $0x30] sm:$0xff]  }
 0x290   :  { %4717 = vmatmul.mubr.msk.bf16.gmra.mrb[76].mxu0 %vm254_vm1, %v6401_v51  ;;  %v6782_v59 = vpop.f32.mrb[72].mxu1 }
 0x291   :  { %2269 = vmatprep.mubr.bf16.mxu0 %v5917_v0  ;;  %7265 = vst [vmem:[#allocation44_spill] sm:$0xff] %v6782_v59  ;;  %v6785_v60 = vpop.f32.mrb[73].mxu1 }
 0x292   :  { %7266 = vst [vmem:[#allocation45_spill] sm:$0xff] %v6785_v60  ;;  %v6787_v55 = vpop.f32.mrb[74].mxu1 }
 0x293   :  { %7267 = vst [vmem:[#allocation46_spill] sm:$0xff] %v6787_v55  ;;  %v6789_v56 = vpop.f32.mrb[75].mxu1 }
 0x294   :  { %7268 = vst [vmem:[#allocation47_spill] sm:$0xff] %v6789_v56  ;;  %v5862_v56 = vld [vmem:[%s7219_s0 + $0x38] sm:$0xff]  }
 0x298   :  { %4718 = vmatmul.mubr.msk.bf16.gmra.mrb[80].mxu0 %vm254_vm1, %v6552_v57  ;;  %v6795_v61 = vpop.f32.mrb[76].mxu1 }
 0x299   :  { %2279 = vmatprep.mubr.bf16.mxu0 %v5917_v0  ;;  %7269 = vst [vmem:[#allocation48_spill] sm:$0xff] %v6795_v61  ;;  %v6798_v53 = vpop.f32.mrb[77].mxu1 }
 0x29a   :  { %v6800_v59 = vpop.f32.mrb[78].mxu1 }
 0x29b   :  { %7270 = vst [vmem:[#allocation49_spill] sm:$0xff] %v6800_v59  ;;  %v6802_v52 = vpop.f32.mrb[79].mxu1 }
 0x29c   :  { %7271 = vst [vmem:[#allocation50_spill] sm:$0xff] %v6802_v52 }
 0x2a0   :  { %4719 = vmatmul.mubr.msk.bf16.gmra.mrb[84].mxu0 %vm254_vm1, %v6778_v58  ;;  %v6808_v55 = vpop.f32.mrb[80].mxu1 }
 0x2a1   :  { %2447 = vmatprep.mubr.bf16.mxu0 %v5917_v0  ;;  %7272 = vst [vmem:[#allocation51_spill] sm:$0xff] %v6808_v55 }
 0x2a8   :  { %4730 = vmatmul.mubr.msk.bf16.vlgmr.msra.gmra.mrb[0].mxu0 %vm254_vm1, %v5861_v54  ;;  %v6811_v54 = vpop.f32.mrb[81].mxu1 }
 0x2a9   :  { %2457 = vmatprep.mubr.bf16.mxu0 %v5917_v0  ;;  %v6813_v61 = vpop.f32.mrb[82].mxu1 }
 0x2aa   :  { %v6815_v60 = vpop.f32.mrb[83].mxu1 }
 0x2ab   :  { %v6819_v52 = vpop.f32.mrb[84].mxu1 }
 0x2ac   :  { %v6822_v59 = vpop.f32.mrb[85].mxu1 }
 0x2b0   :  { %4731 = vmatmul.mubr.msk.bf16.gmra.mrb[4].mxu0 %vm254_vm1, %v5862_v56  ;;  %v6824_v56 = vpop.f32.mrb[86].mxu1 }
 0x2b1   :  { %2467 = vmatprep.mubr.bf16.mxu0 %v5917_v0  ;;  %v6826_v55 = vpop.f32.mrb[87].mxu1 }
 0x2b8   :  { %4732 = vmatmul.mubr.msk.bf16.gmra.mrb[8].mxu0 %vm254_vm1, %v6118_v24  ;;  %v5703_v24 = vld [vmem:[#allocation2 + $0x84] ss:$8 sps:$4 sm:$0xff]  }
 0x2b9   :  { %2477 = vmatprep.mubr.bf16.mxu0 %v5917_v0  ;;  %3041 = vmatprep.subr.bf16.mxu1 %v5703_v24  ;;  %v5716_v24 = vld [vmem:[#allocation2 + $0xd0] ss:$8 sps:$4 sm:$0xff]  }
 0x2c0   :  { %4733 = vmatmul.mubr.msk.bf16.gmra.mrb[12].mxu0 %vm254_vm1, %v6129_v25  ;;  %v5701_v25 = vld [vmem:[#allocation2 + $0x80] ss:$8 sps:$4 sm:$0xff]  }
 0x2c1   :  { %2487 = vmatprep.mubr.bf16.mxu0 %v5917_v0  ;;  %3042 = vmatpush1.bf16.msra.mxu1 %v5701_v25  ;;  %v5721_v25 = vld [vmem:[#allocation2 + $0xe4] ss:$8 sps:$4 sm:$0xff]  }
 0x2c8   :  { %4734 = vmatmul.mubr.msk.bf16.gmra.mrb[16].mxu0 %vm254_vm1, %v6140_v26  ;;  %v5706_v26 = vld [vmem:[#allocation2 + $0x94] ss:$8 sps:$4 sm:$0xff]  }
 0x2c9   :  { %2497 = vmatprep.mubr.bf16.mxu0 %v5917_v0  ;;  %3043 = vmatprep.subr.bf16.mxu1 %v5706_v26  ;;  %v5719_v26 = vld [vmem:[#allocation2 + $0xe0] ss:$8 sps:$4 sm:$0xff]  }
 0x2d0   :  { %4735 = vmatmul.mubr.msk.bf16.gmra.mrb[20].mxu0 %vm254_vm1, %v6151_v27  ;;  %v5704_v27 = vld [vmem:[#allocation2 + $0x90] ss:$8 sps:$4 sm:$0xff]  }
 0x2d1   :  { %2507 = vmatprep.mubr.bf16.mxu0 %v5917_v0  ;;  %3044 = vmatpush1.bf16.msra.mxu1 %v5704_v27  ;;  %v5722_v27 = vld [vmem:[#allocation2 + $0xf0] ss:$8 sps:$4 sm:$0xff]  }
 0x2d8   :  { %4736 = vmatmul.mubr.msk.bf16.gmra.mrb[24].mxu0 %vm254_vm1, %v6162_v28  ;;  %v5709_v28 = vld [vmem:[#allocation2 + $0xa4] ss:$8 sps:$4 sm:$0xff]  }
 0x2d9   :  { %2517 = vmatprep.mubr.bf16.mxu0 %v5917_v0  ;;  %3045 = vmatprep.subr.bf16.mxu1 %v5709_v28 }
 0x2e0   :  { %4737 = vmatmul.mubr.msk.bf16.gmra.mrb[28].mxu0 %vm254_vm1, %v6173_v29  ;;  %v5707_v29 = vld [vmem:[#allocation2 + $0xa0] ss:$8 sps:$4 sm:$0xff]  }
 0x2e1   :  { %2527 = vmatprep.mubr.bf16.mxu0 %v5917_v0  ;;  %3046 = vmatpush1.bf16.msra.mxu1 %v5707_v29 }
 0x2e8   :  { %4738 = vmatmul.mubr.msk.bf16.gmra.mrb[32].mxu0 %vm254_vm1, %v6184_v30  ;;  %v5712_v30 = vld [vmem:[#allocation2 + $0xb4] ss:$8 sps:$4 sm:$0xff]  }
 0x2e9   :  { %2537 = vmatprep.mubr.bf16.mxu0 %v5917_v0  ;;  %3047 = vmatprep.subr.bf16.mxu1 %v5712_v30 }
 0x2f0   :  { %4739 = vmatmul.mubr.msk.bf16.gmra.mrb[36].mxu0 %vm254_vm1, %v6230_v35  ;;  %v5710_v35 = vld [vmem:[#allocation2 + $0xb0] ss:$8 sps:$4 sm:$0xff]  }
 0x2f1   :  { %2547 = vmatprep.mubr.bf16.mxu0 %v5917_v0  ;;  %3048 = vmatpush1.bf16.msra.mxu1 %v5710_v35 }
 0x2f8   :  { %4740 = vmatmul.mubr.msk.bf16.gmra.mrb[40].mxu0 %vm254_vm1, %v6241_v36  ;;  %v5715_v36 = vld [vmem:[#allocation2 + $0xc4] ss:$8 sps:$4 sm:$0xff]  }
 0x2f9   :  { %2557 = vmatprep.mubr.bf16.mxu0 %v5917_v0  ;;  %3049 = vmatprep.subr.bf16.mxu1 %v5715_v36 }
 0x300   :  { %4741 = vmatmul.mubr.msk.bf16.gmra.mrb[44].mxu0 %vm254_vm1, %v6252_v37  ;;  %v5713_v37 = vld [vmem:[#allocation2 + $0xc0] ss:$8 sps:$4 sm:$0xff]  }
 0x301   :  { %2567 = vmatprep.mubr.bf16.mxu0 %v5917_v0  ;;  %3050 = vmatpush1.bf16.msra.mxu1 %v5713_v37 }
 0x308   :  { %4742 = vmatmul.mubr.msk.bf16.gmra.mrb[48].mxu0 %vm254_vm1, %v6266_v39  ;;  %v5718_v39 = vld [vmem:[#allocation2 + $0xd4] ss:$8 sps:$4 sm:$0xff]  }
 0x309   :  { %2577 = vmatprep.mubr.bf16.mxu0 %v5917_v0  ;;  %3051 = vmatprep.subr.bf16.mxu1 %v5718_v39  ;;  %v6893_v39 = vld [vmem:[%s7221_s2] ss:$0 sm:$0xff] }
 0x30a   :  { %3052 = vmatpush1.bf16.msra.mxu1 %v5716_v24 }
 0x30b   :  { %3053 = vmatprep.subr.bf16.mxu1 %v5721_v25 }
 0x30e   :  { %3054 = vmatpush1.bf16.msra.mxu1 %v5719_v26 }
 0x310   :  { %4743 = vmatmul.mubr.msk.bf16.gmra.mrb[52].mxu0 %vm254_vm1, %v6277_v40  ;;  %v5724_v40 = vld [vmem:[#allocation2 + $0xf4] ss:$8 sps:$4 sm:$0xff]  }
 0x311   :  { %2587 = vmatprep.mubr.bf16.mxu0 %v5917_v0  ;;  %3055 = vmatprep.subr.bf16.mxu1 %v5724_v40 }
 0x312   :  { %3056 = vmatpush1.bf16.msra.mxu1 %v5722_v27 }
 0x318   :  { %4744 = vmatmul.mubr.msk.bf16.gmra.mrb[56].mxu0 %vm254_vm1, %v6294_v43  ;;  %v5700_v43 = vld [vmem:[%s7219_s0 + $0xd8] sm:$0xff]  }
 0x319   :  { %2597 = vmatprep.mubr.bf16.mxu0 %v5917_v0 }
 0x320   :  { %4745 = vmatmul.mubr.msk.bf16.gmra.mrb[60].mxu0 %vm254_vm1, %v6313_v47  ;;  %v5727_v47 = vld [vmem:[#allocation2 + $0x4] ss:$8 sps:$4 sm:$0xff]  }
 0x321   :  { %2607 = vmatprep.mubr.bf16.mxu0 %v5917_v0  ;;  %3220 = vmatprep.subr.bf16.mxu1 %v5727_v47 }
 0x328   :  { %4746 = vmatmul.mubr.msk.bf16.gmra.mrb[64].mxu0 %vm254_vm1, %v6325_v48 }
 0x329   :  { %2617 = vmatprep.mubr.bf16.mxu0 %v5917_v0 }
 0x330   :  { %4747 = vmatmul.mubr.msk.bf16.gmra.mrb[68].mxu0 %vm254_vm1, %v6390_v50 }
 0x331   :  { %2627 = vmatprep.mubr.bf16.mxu0 %v5917_v0 }
 0x338   :  { %4748 = vmatmul.mubr.msk.bf16.gmra.mrb[72].mxu0 %vm254_vm1, %v6401_v51 }
 0x339   :  { %2637 = vmatprep.mubr.bf16.mxu0 %v5917_v0 }
 0x340   :  { %4749 = vmatmul.mubr.msk.bf16.gmra.mrb[76].mxu0 %vm254_vm1, %v6552_v57 }
 0x341   :  { %2647 = vmatprep.mubr.bf16.mxu0 %v5917_v0 }
 0x348   :  { %4750 = vmatmul.mubr.msk.bf16.gmra.mrb[80].mxu0 %vm254_vm1, %v6778_v58 }
 0x349   :  { %2657 = vmatprep.mubr.bf16.mxu0 %v5917_v0 }
 0x350   :  { %4751 = vmatmul.mubr.msk.bf16.gmra.mrb[84].mxu0 %vm254_vm1, %v5700_v43 }
 0x37b   :  { %v2449_v48 = vpop.f32.mrb[0].mxu0 }
 0x37c   :  { %v4988_v50 = vadd.f32 %v2449_v48, %v6573_v62  ;;  %v2451_v51 = vpop.f32.mrb[1].mxu0 }
 0x37d   :  { %v4989_v57 = vadd.f32 %v2451_v51, %v6576_v63  ;;  %v2453_v28 = vpop.f32.mrb[2].mxu0 }
 0x37e   :  { %v4990_v29 = vadd.f32 %v2453_v28, %v6578_v1  ;;  %v2455_v58 = vpop.f32.mrb[3].mxu0 }
 0x37f   :  { %v2756_v30 = vmax.f32 %v4988_v50, %v4989_v57  ;;  %v4991_v35 = vadd.f32 %v2455_v58, %v6580_v2 }
 0x381   :  { %v2757_v36 = vmax.f32 %v4990_v29, %v4991_v35  ;;  %v2807_v40 = vadd.f32 %v6893_v39, %v2756_v30 }
 0x383   :  { %v2459_v37 = vpop.f32.mrb[4].mxu0  ;;  %v2808_v43 = vadd.f32 %v6893_v39, %v2757_v36  ;;  %v2851_v50 = vmax.f32 %v2807_v40, 0.0 }
 0x384   :  { %v4992_v24 = vadd.f32 %v2459_v37, %v6584_v3  ;;  %v2461_v62 = vpop.f32.mrb[5].mxu0 }
 0x385   :  { %v4993_v25 = vadd.f32 %v2461_v62, %v6587_v4  ;;  %v2463_v63 = vpop.f32.mrb[6].mxu0 }
 0x386   :  { %v4994_v26 = vadd.f32 %v2463_v63, %v6589_v5  ;;  %v2465_v1 = vpop.f32.mrb[7].mxu0  ;;  %v2852_v5 = vmax.f32 %v2808_v43, 0.0 }
 0x387   :  { %v2758_v27 = vmax.f32 %v4992_v24, %v4993_v25  ;;  %v4995_v2 = vadd.f32 %v2465_v1, %v6591_v6 }
 0x389   :  { %v2809_v47 = vadd.f32 %v6893_v39, %v2758_v27  ;;  %v2759_v48 = vmax.f32 %v4994_v26, %v4995_v2 }
 0x38b   :  { %v2853_v51 = vmax.f32 %v2809_v47, 0.0  ;;  %v2810_v3 = vadd.f32 %v6893_v39, %v2759_v48  ;;  %v2469_v57 = vpop.f32.mrb[8].mxu0 }
 0x38c   :  { %v4996_v4 = vadd.f32 %v2469_v57, %v6595_v7  ;;  %v2471_v28 = vpop.f32.mrb[9].mxu0 }
 0x38d   :  { %v6904_v29 = vmax.f32 %v2851_v50, %v2853_v51  ;;  %v2854_v58 = vmax.f32 %v2810_v3, 0.0  ;;  %v4997_v30 = vadd.f32 %v2471_v28, %v6598_v8  ;;  %v2473_v6 = vpop.f32.mrb[10].mxu0 }
 0x38e   :  { %v4998_v35 = vadd.f32 %v2473_v6, %v6600_v9  ;;  %v2475_v36 = vpop.f32.mrb[11].mxu0 }
 0x38f   :  { %v6908_v37 = vmax.f32 %v2852_v5, %v2854_v58  ;;  %v2760_v24 = vmax.f32 %v4996_v4, %v4997_v30  ;;  %v4999_v62 = vadd.f32 %v2475_v36, %v6602_v10 }
 0x391   :  { %v2917_v25 = vpack.c.bf16 %v6908_v37, %v6904_v29  ;;  %v2761_v7 = vmax.f32 %v4998_v35, %v4999_v62  ;;  %v2811_v2 = vadd.f32 %v6893_v39, %v2760_v24  ;;  %v5725_v62 = vld [vmem:[#allocation2] ss:$8 sps:$4 sm:$0xff]   ;;  %v7312_v37 = vld [vmem:[#allocation47_spill] sm:$0xff] }
 0x393   :  { %v2479_v63 = vpop.f32.mrb[12].mxu0  ;;  %v2812_v10 = vadd.f32 %v6893_v39, %v2761_v7  ;;  %v2855_v51 = vmax.f32 %v2811_v2, 0.0 }
 0x394   :  { %v5000_v26 = vadd.f32 %v2479_v63, %v6606_v11  ;;  %v2481_v1 = vpop.f32.mrb[13].mxu0 }
 0x395   :  { %v5001_v40 = vadd.f32 %v2481_v1, %v6609_v12  ;;  %v2483_v8 = vpop.f32.mrb[14].mxu0 }
 0x396   :  { %v5002_v27 = vadd.f32 %v2483_v8, %v6611_v13  ;;  %v2485_v9 = vpop.f32.mrb[15].mxu0  ;;  %v2856_v13 = vmax.f32 %v2812_v10, 0.0 }
 0x397   :  { %v2762_v43 = vmax.f32 %v5000_v26, %v5001_v40  ;;  %v5003_v47 = vadd.f32 %v2485_v9, %v6613_v14  ;;  %v5730_v26 = vld [vmem:[#allocation2 + $0x14] ss:$8 sps:$4 sm:$0xff]  }
 0x399   :  { %v2813_v48 = vadd.f32 %v6893_v39, %v2762_v43  ;;  %v2763_v50 = vmax.f32 %v5002_v27, %v5003_v47 }
 0x39b   :  { %v2857_v3 = vmax.f32 %v2813_v48, 0.0  ;;  %v2814_v11 = vadd.f32 %v6893_v39, %v2763_v50  ;;  %v2489_v57 = vpop.f32.mrb[16].mxu0 }
 0x39c   :  { %v5004_v12 = vadd.f32 %v2489_v57, %v6617_v15  ;;  %v2491_v4 = vpop.f32.mrb[17].mxu0 }
 0x39d   :  { %v2897_v28 = vmax.f32 %v2855_v51, %v2857_v3  ;;  %v2858_v5 = vmax.f32 %v2814_v11, 0.0  ;;  %v5005_v58 = vadd.f32 %v2491_v4, %v6620_v16  ;;  %v2493_v30 = vpop.f32.mrb[18].mxu0  ;;  %v5728_v16 = vld [vmem:[#allocation2 + $0x10] ss:$8 sps:$4 sm:$0xff]  }
 0x39e   :  { %v5006_v14 = vadd.f32 %v2493_v30, %v6622_v17  ;;  %v2495_v6 = vpop.f32.mrb[19].mxu0  ;;  %v5734_v4 = vld [vmem:[#allocation2 + $0x30] ss:$8 sps:$4 sm:$0xff]   ;;  %v5739_v30 = vld [vmem:[#allocation2 + $0x44] ss:$8 sps:$4 sm:$0xff]  }
 0x39f   :  { %v2898_v35 = vmax.f32 %v2856_v13, %v2858_v5  ;;  %v2764_v36 = vmax.f32 %v5004_v12, %v5005_v58  ;;  %v5007_v24 = vadd.f32 %v2495_v6, %v6624_v18  ;;  %v5733_v18 = vld [vmem:[#allocation2 + $0x24] ss:$8 sps:$4 sm:$0xff]  }
 0x3a1   :  { %v6925_v7 = vpack.c.bf16 %v2898_v35, %v2897_v28  ;;  %v2765_v63 = vmax.f32 %v5006_v14, %v5007_v24  ;;  %v2815_v2 = vadd.f32 %v6893_v39, %v2764_v36 }
 0x3a3   :  { %v2499_v15 = vpop.f32.mrb[20].mxu0  ;;  %3074 = vmatmul.mubr.bf16.vlgmr.msra.gmra.mrb[88].mxu1 %v6925_v7  ;;  %v2816_v10 = vadd.f32 %v6893_v39, %v2765_v63  ;;  %v2859_v51 = vmax.f32 %v2815_v2, 0.0 }
 0x3a4   :  { %v5008_v1 = vadd.f32 %v2499_v15, %v6628_v19  ;;  %v2501_v40 = vpop.f32.mrb[21].mxu0  ;;  %3083 = vmatprep.mubr.bf16.mxu1 %v5917_v0  ;;  %3221 = vmatpush1.bf16.msra.mxu1 %v5725_v62  ;;  %v5731_v19 = vld [vmem:[#allocation2 + $0x20] ss:$8 sps:$4 sm:$0xff]  }
 0x3a5   :  { %v5009_v17 = vadd.f32 %v2501_v40, %v6631_v20  ;;  %v2503_v8 = vpop.f32.mrb[22].mxu0  ;;  %3222 = vmatprep.subr.bf16.mxu1 %v5730_v26  ;;  %v5736_v20 = vld [vmem:[#allocation2 + $0x34] ss:$8 sps:$4 sm:$0xff]  }
 0x3a6   :  { %v5010_v27 = vadd.f32 %v2503_v8, %v6633_v21  ;;  %v2505_v9 = vpop.f32.mrb[23].mxu0  ;;  %v5742_v26 = vld [vmem:[#allocation2 + $0x54] ss:$8 sps:$4 sm:$0xff]  }
 0x3a7   :  { %v2766_v43 = vmax.f32 %v5008_v1, %v5009_v17  ;;  %v5011_v47 = vadd.f32 %v2505_v9, %v6635_v22  ;;  %v2860_v22 = vmax.f32 %v2816_v10, 0.0 }
 0x3a8   :  { %3223 = vmatpush1.bf16.msra.mxu1 %v5728_v16  ;;  %v5745_v16 = vld [vmem:[#allocation2 + $0x64] ss:$8 sps:$4 sm:$0xff]  }
 0x3a9   :  { %v2817_v48 = vadd.f32 %v6893_v39, %v2766_v43  ;;  %v2767_v50 = vmax.f32 %v5010_v27, %v5011_v47  ;;  %3224 = vmatprep.subr.bf16.mxu1 %v5733_v18 }
 0x3ab   :  { %v2861_v3 = vmax.f32 %v2817_v48, 0.0  ;;  %v2818_v11 = vadd.f32 %v6893_v39, %v2767_v50  ;;  %v2509_v21 = vpop.f32.mrb[24].mxu0 }
 0x3ac   :  { %v5012_v57 = vadd.f32 %v2509_v21, %v6639_v23  ;;  %v2511_v12 = vpop.f32.mrb[25].mxu0  ;;  %3225 = vmatpush1.bf16.msra.mxu1 %v5731_v19  ;;  %v5737_v23 = vld [vmem:[#allocation2 + $0x40] ss:$8 sps:$4 sm:$0xff]  }
 0x3ad   :  { %v2862_v13 = vmax.f32 %v2818_v11, 0.0  ;;  %v5013_v28 = vadd.f32 %v2511_v12, %v6642_v31  ;;  %v2513_v5 = vpop.f32.mrb[26].mxu0  ;;  %v2899_v58 = vmax.f32 %v2859_v51, %v2861_v3  ;;  %3226 = vmatprep.subr.bf16.mxu1 %v5736_v20  ;;  %v5746_v51 = vld [vmem:[#allocation2 + $0x70] ss:$8 sps:$4 sm:$0xff]   ;;  %v5751_v12 = vld [vmem:[#allocation2 + $0x104] ss:$8 sps:$4 sm:$0xff]  }
 0x3ae   :  { %v5014_v14 = vadd.f32 %v2513_v5, %v6644_v32  ;;  %v2515_v6 = vpop.f32.mrb[27].mxu0  ;;  %v5740_v32 = vld [vmem:[#allocation2 + $0x50] ss:$8 sps:$4 sm:$0xff]  }
 0x3af   :  { %v2768_v35 = vmax.f32 %v5012_v57, %v5013_v28  ;;  %v5015_v36 = vadd.f32 %v2515_v6, %v6646_v33  ;;  %v2900_v24 = vmax.f32 %v2860_v22, %v2862_v13 }
 0x3b0   :  { %3227 = vmatpush1.bf16.msra.mxu1 %v5734_v4 }
 0x3b1   :  { %v2769_v62 = vmax.f32 %v5014_v14, %v5015_v36  ;;  %v6941_v63 = vpack.c.bf16 %v2900_v24, %v2899_v58  ;;  %3228 = vmatprep.subr.bf16.mxu1 %v5739_v30  ;;  %v2819_v18 = vadd.f32 %v6893_v39, %v2768_v35  ;;  %v7273_v14 = vld [vmem:[#allocation8_spill] sm:$0xff]  ;;  %v7274_v35 = vld [vmem:[#allocation9_spill] sm:$0xff]  ;;  %v7275_v24 = vld [vmem:[#allocation10_spill] sm:$0xff] }
 0x3b3   :  { %v2519_v15 = vpop.f32.mrb[28].mxu0  ;;  %3084 = vmatmul.mubr.bf16.gmra.mrb[92].mxu1 %v6941_v63  ;;  %v2820_v2 = vadd.f32 %v6893_v39, %v2769_v62  ;;  %v2863_v19 = vmax.f32 %v2819_v18, 0.0  ;;  %v7277_v18 = vld [vmem:[#allocation12_spill] sm:$0xff] }
 0x3b4   :  { %v5016_v31 = vadd.f32 %v2519_v15, %v6650_v34  ;;  %v2521_v1 = vpop.f32.mrb[29].mxu0  ;;  %3093 = vmatprep.mubr.bf16.mxu1 %v5917_v0  ;;  %3229 = vmatpush1.bf16.msra.mxu1 %v5737_v23  ;;  %v5743_v34 = vld [vmem:[#allocation2 + $0x60] ss:$8 sps:$4 sm:$0xff]   ;;  %v7276_v15 = vld [vmem:[#allocation11_spill] sm:$0xff] }
 0x3b5   :  { %v5017_v33 = vadd.f32 %v2521_v1, %v6653_v38  ;;  %v2523_v40 = vpop.f32.mrb[30].mxu0  ;;  %3230 = vmatprep.subr.bf16.mxu1 %v5742_v26  ;;  %v5748_v38 = vld [vmem:[#allocation2 + $0x74] ss:$8 sps:$4 sm:$0xff]  }
 0x3b6   :  { %v5018_v17 = vadd.f32 %v2523_v40, %v6655_v41  ;;  %v2525_v8 = vpop.f32.mrb[31].mxu0 }
 0x3b7   :  { %v2770_v27 = vmax.f32 %v5016_v31, %v5017_v33  ;;  %v5019_v9 = vadd.f32 %v2525_v8, %v6657_v42  ;;  %v2864_v42 = vmax.f32 %v2820_v2, 0.0 }
 0x3b8   :  { %3231 = vmatpush1.bf16.msra.mxu1 %v5740_v32 }
 0x3b9   :  { %v2821_v43 = vadd.f32 %v6893_v39, %v2770_v27  ;;  %v2771_v47 = vmax.f32 %v5018_v17, %v5019_v9  ;;  %3232 = vmatprep.subr.bf16.mxu1 %v5745_v16 }
 0x3bb   :  { %v2865_v10 = vmax.f32 %v2821_v43, 0.0  ;;  %v2822_v48 = vadd.f32 %v6893_v39, %v2771_v47  ;;  %v2529_v41 = vpop.f32.mrb[32].mxu0  ;;  %v7278_v47 = vld [vmem:[#allocation13_spill] sm:$0xff] }
 0x3bc   :  { %v5020_v50 = vadd.f32 %v2529_v41, %v6661_v44  ;;  %v2531_v20 = vpop.f32.mrb[33].mxu0  ;;  %3233 = vmatpush1.bf16.msra.mxu1 %v5743_v34 }
 0x3bd   :  { %v2901_v3 = vmax.f32 %v2863_v19, %v2865_v10  ;;  %v2866_v11 = vmax.f32 %v2822_v48, 0.0  ;;  %v5021_v21 = vadd.f32 %v2531_v20, %v6664_v45  ;;  %v2533_v57 = vpop.f32.mrb[34].mxu0  ;;  %3234 = vmatprep.subr.bf16.mxu1 %v5748_v38  ;;  %v7279_v10 = vld [vmem:[#allocation14_spill] sm:$0xff] }
 0x3be   :  { %v5022_v4 = vadd.f32 %v2533_v57, %v6666_v46  ;;  %v2535_v22 = vpop.f32.mrb[35].mxu0  ;;  %v7281_v57 = vld [vmem:[#allocation16_spill] sm:$0xff] }
 0x3bf   :  { %v2902_v13 = vmax.f32 %v2864_v42, %v2866_v11  ;;  %v2772_v28 = vmax.f32 %v5020_v50, %v5021_v21  ;;  %v5023_v5 = vadd.f32 %v2535_v22, %v6668_v49  ;;  %v7282_v22 = vld [vmem:[#allocation17_spill] sm:$0xff] }
 0x3c0   :  { %3235 = vmatpush1.bf16.msra.mxu1 %v5746_v51  ;;  %v7280_v51 = vld [vmem:[#allocation15_spill] sm:$0xff] }
 0x3c1   :  { %v2773_v44 = vmax.f32 %v5022_v4, %v5023_v5  ;;  %v6957_v58 = vpack.c.bf16 %v2902_v13, %v2901_v3  ;;  %3416 = vmatprep.subr.bf16.mxu1 %v5751_v12  ;;  %v2823_v49 = vadd.f32 %v6893_v39, %v2772_v28  ;;  %v7283_v5 = vld [vmem:[#allocation18_spill] sm:$0xff] }
 0x3c3   :  { %v2539_v30 = vpop.f32.mrb[36].mxu0  ;;  %3094 = vmatmul.mubr.bf16.gmra.mrb[96].mxu1 %v6957_v58  ;;  %v2824_v1 = vadd.f32 %v6893_v39, %v2773_v44  ;;  %v2867_v40 = vmax.f32 %v2823_v49, 0.0 }
 0x3c4   :  { %v5024_v45 = vadd.f32 %v2539_v30, %v7273_v14  ;;  %v2541_v6 = vpop.f32.mrb[37].mxu0  ;;  %3103 = vmatprep.mubr.bf16.mxu1 %v5917_v0 }
 0x3c5   :  { %v5025_v46 = vadd.f32 %v2541_v6, %v7274_v35  ;;  %v2543_v36 = vpop.f32.mrb[38].mxu0  ;;  %v2868_v34 = vmax.f32 %v2824_v1, 0.0  ;;  %v7284_v6 = vld [vmem:[#allocation19_spill] sm:$0xff] }
 0x3c6   :  { %v5026_v23 = vadd.f32 %v2543_v36, %v7275_v24  ;;  %v2545_v62 = vpop.f32.mrb[39].mxu0 }
 0x3c7   :  { %v2774_v26 = vmax.f32 %v5024_v45, %v5025_v46  ;;  %v5027_v31 = vadd.f32 %v2545_v62, %v7276_v15  ;;  %v7285_v15 = vld [vmem:[#allocation20_spill] sm:$0xff] }
 0x3c9   :  { %v2825_v32 = vadd.f32 %v6893_v39, %v2774_v26  ;;  %v2775_v33 = vmax.f32 %v5026_v23, %v5027_v31 }
 0x3cb   :  { %v2869_v16 = vmax.f32 %v2825_v32, 0.0  ;;  %v2826_v17 = vadd.f32 %v6893_v39, %v2775_v33  ;;  %v2549_v8 = vpop.f32.mrb[40].mxu0 }
 0x3cc   :  { %v5028_v27 = vadd.f32 %v2549_v8, %v7277_v18  ;;  %v2551_v9 = vpop.f32.mrb[41].mxu0  ;;  %v7287_v18 = vld [vmem:[#allocation22_spill] sm:$0xff] }
 0x3cd   :  { %v2903_v2 = vmax.f32 %v2867_v40, %v2869_v16  ;;  %v2870_v43 = vmax.f32 %v2826_v17, 0.0  ;;  %v5029_v38 = vadd.f32 %v2551_v9, %v7278_v47  ;;  %v2553_v19 = vpop.f32.mrb[42].mxu0  ;;  %v7286_v16 = vld [vmem:[#allocation21_spill] sm:$0xff] }
 0x3ce   :  { %v5030_v48 = vadd.f32 %v2553_v19, %v7279_v10  ;;  %v2555_v41 = vpop.f32.mrb[43].mxu0 }
 0x3cf   :  { %v2904_v50 = vmax.f32 %v2868_v34, %v2870_v43  ;;  %v2776_v20 = vmax.f32 %v5028_v27, %v5029_v38  ;;  %v5031_v42 = vadd.f32 %v2555_v41, %v7280_v51  ;;  %v7288_v43 = vld [vmem:[#allocation23_spill] sm:$0xff] }
 0x3d1   :  { %v6973_v3 = vpack.c.bf16 %v2904_v50, %v2903_v2  ;;  %v2777_v11 = vmax.f32 %v5030_v48, %v5031_v42  ;;  %v2827_v14 = vadd.f32 %v6893_v39, %v2776_v20  ;;  %v7289_v48 = vld [vmem:[#allocation24_spill] sm:$0xff]  ;;  %v7290_v20 = vld [vmem:[#allocation25_spill] sm:$0xff] }
 0x3d3   :  { %v2559_v21 = vpop.f32.mrb[44].mxu0  ;;  %3104 = vmatmul.mubr.bf16.gmra.mrb[100].mxu1 %v6973_v3  ;;  %v2828_v46 = vadd.f32 %v6893_v39, %v2777_v11  ;;  %v2871_v23 = vmax.f32 %v2827_v14, 0.0  ;;  %v7291_v11 = vld [vmem:[#allocation26_spill] sm:$0xff] }
 0x3d4   :  { %v5032_v12 = vadd.f32 %v2559_v21, %v7281_v57  ;;  %v2561_v4 = vpop.f32.mrb[45].mxu0  ;;  %3113 = vmatprep.mubr.bf16.mxu1 %v5917_v0 }
 0x3d5   :  { %v5033_v13 = vadd.f32 %v2561_v4, %v7282_v22  ;;  %v2563_v28 = vpop.f32.mrb[46].mxu0  ;;  %v2872_v32 = vmax.f32 %v2828_v46, 0.0  ;;  %v7292_v22 = vld [vmem:[#allocation27_spill] sm:$0xff] }
 0x3d6   :  { %v5034_v44 = vadd.f32 %v2563_v28, %v7283_v5  ;;  %v2565_v30 = vpop.f32.mrb[47].mxu0 }
 0x3d7   :  { %v2778_v45 = vmax.f32 %v5032_v12, %v5033_v13  ;;  %v5035_v35 = vadd.f32 %v2565_v30, %v7284_v6 }
 0x3d9   :  { %v2829_v36 = vadd.f32 %v6893_v39, %v2778_v45  ;;  %v2779_v24 = vmax.f32 %v5034_v44, %v5035_v35  ;;  %v7293_v35 = vld [vmem:[#allocation28_spill] sm:$0xff] }
 0x3db   :  { %v2873_v62 = vmax.f32 %v2829_v36, 0.0  ;;  %v2830_v49 = vadd.f32 %v6893_v39, %v2779_v24  ;;  %v2569_v26 = vpop.f32.mrb[48].mxu0 }
 0x3dc   :  { %v5036_v31 = vadd.f32 %v2569_v26, %v7285_v15  ;;  %v2571_v1 = vpop.f32.mrb[49].mxu0 }
 0x3dd   :  { %v2905_v33 = vmax.f32 %v2871_v23, %v2873_v62  ;;  %v2874_v40 = vmax.f32 %v2830_v49, 0.0  ;;  %v5037_v17 = vadd.f32 %v2571_v1, %v7286_v16  ;;  %v2573_v8 = vpop.f32.mrb[50].mxu0  ;;  %v7294_v49 = vld [vmem:[#allocation29_spill] sm:$0xff]  ;;  %v7296_v16 = vld [vmem:[#allocation31_spill] sm:$0xff] }
 0x3de   :  { %v5038_v27 = vadd.f32 %v2573_v8, %v7287_v18  ;;  %v2575_v9 = vpop.f32.mrb[51].mxu0 }
 0x3df   :  { %v2906_v34 = vmax.f32 %v2872_v32, %v2874_v40  ;;  %v2780_v2 = vmax.f32 %v5036_v31, %v5037_v17  ;;  %v5039_v47 = vadd.f32 %v2575_v9, %v7288_v43  ;;  %v7295_v31 = vld [vmem:[#allocation30_spill] sm:$0xff]  ;;  %v7297_v9 = vld [vmem:[#allocation32_spill] sm:$0xff]  ;;  %v7298_v43 = vld [vmem:[#allocation33_spill] sm:$0xff] }
 0x3e1   :  { %v6989_v38 = vpack.c.bf16 %v2906_v34, %v2905_v33  ;;  %v2781_v19 = vmax.f32 %v5038_v27, %v5039_v47  ;;  %v2831_v12 = vadd.f32 %v6893_v39, %v2780_v2 }
 0x3e3   :  { %v2579_v10 = vpop.f32.mrb[52].mxu0  ;;  %3114 = vmatmul.mubr.bf16.gmra.mrb[104].mxu1 %v6989_v38  ;;  %v2832_v28 = vadd.f32 %v6893_v39, %v2781_v19  ;;  %v2875_v30 = vmax.f32 %v2831_v12, 0.0 }
 0x3e4   :  { %v5040_v41 = vadd.f32 %v2579_v10, %v7289_v48  ;;  %v2581_v50 = vpop.f32.mrb[53].mxu0  ;;  %3123 = vmatprep.mubr.bf16.mxu1 %v5917_v0  ;;  %v7299_v10 = vld [vmem:[#allocation34_spill] sm:$0xff] }
 0x3e5   :  { %v5041_v51 = vadd.f32 %v2581_v50, %v7290_v20  ;;  %v2583_v42 = vpop.f32.mrb[54].mxu0  ;;  %v2876_v24 = vmax.f32 %v2832_v28, 0.0  ;;  %v7301_v28 = vld [vmem:[#allocation36_spill] sm:$0xff] }
 0x3e6   :  { %v5042_v21 = vadd.f32 %v2583_v42, %v7291_v11  ;;  %v2585_v57 = vpop.f32.mrb[55].mxu0 }
 0x3e7   :  { %v2782_v4 = vmax.f32 %v5040_v41, %v5041_v51  ;;  %v5043_v13 = vadd.f32 %v2585_v57, %v7292_v22  ;;  %v7300_v51 = vld [vmem:[#allocation35_spill] sm:$0xff] }
 0x3e9   :  { %v2833_v5 = vadd.f32 %v6893_v39, %v2782_v4  ;;  %v2783_v44 = vmax.f32 %v5042_v21, %v5043_v13 }
 0x3eb   :  { %v2877_v14 = vmax.f32 %v2833_v5, 0.0  ;;  %v2834_v45 = vadd.f32 %v6893_v39, %v2783_v44  ;;  %v2589_v6 = vpop.f32.mrb[56].mxu0 }
 0x3ec   :  { %v5044_v46 = vadd.f32 %v2589_v6, %v7293_v35  ;;  %v2591_v36 = vpop.f32.mrb[57].mxu0  ;;  %v7302_v6 = vld [vmem:[#allocation37_spill] sm:$0xff] }
 0x3ed   :  { %v2907_v23 = vmax.f32 %v2875_v30, %v2877_v14  ;;  %v2878_v62 = vmax.f32 %v2834_v45, 0.0  ;;  %v5045_v26 = vadd.f32 %v2591_v36, %v7294_v49  ;;  %v2593_v15 = vpop.f32.mrb[58].mxu0  ;;  %v7303_v36 = vld [vmem:[#allocation38_spill] sm:$0xff] }
 0x3ee   :  { %v5046_v1 = vadd.f32 %v2593_v15, %v7295_v31  ;;  %v2595_v32 = vpop.f32.mrb[59].mxu0 }
 0x3ef   :  { %v2908_v33 = vmax.f32 %v2876_v24, %v2878_v62  ;;  %v2784_v40 = vmax.f32 %v5044_v46, %v5045_v26  ;;  %v5047_v17 = vadd.f32 %v2595_v32, %v7296_v16  ;;  %v7304_v26 = vld [vmem:[#allocation39_spill] sm:$0xff] }
 0x3f1   :  { %v7005_v8 = vpack.c.bf16 %v2908_v33, %v2907_v23  ;;  %v2785_v18 = vmax.f32 %v5046_v1, %v5047_v17  ;;  %v2835_v50 = vadd.f32 %v6893_v39, %v2784_v40  ;;  %v7305_v33 = vld [vmem:[#allocation40_spill] sm:$0xff]  ;;  %v7306_v17 = vld [vmem:[#allocation41_spill] sm:$0xff] }
 0x3f3   :  { %v2599_v27 = vpop.f32.mrb[60].mxu0  ;;  %3124 = vmatmul.mubr.bf16.gmra.mrb[108].mxu1 %v7005_v8  ;;  %v2836_v11 = vadd.f32 %v6893_v39, %v2785_v18  ;;  %v2879_v12 = vmax.f32 %v2835_v50, 0.0 }
 0x3f4   :  { %v5048_v34 = vadd.f32 %v2599_v27, %v7297_v9  ;;  %v2601_v2 = vpop.f32.mrb[61].mxu0  ;;  %3133 = vmatprep.mubr.bf16.mxu1 %v5917_v0  ;;  %v7307_v9 = vld [vmem:[#allocation42_spill] sm:$0xff] }
 0x3f5   :  { %v5049_v47 = vadd.f32 %v2601_v2, %v7298_v43  ;;  %v2603_v19 = vpop.f32.mrb[62].mxu0  ;;  %v2880_v30 = vmax.f32 %v2836_v11, 0.0 }
 0x3f6   :  { %v5050_v48 = vadd.f32 %v2603_v19, %v7299_v10  ;;  %v2605_v41 = vpop.f32.mrb[63].mxu0  ;;  %v7308_v19 = vld [vmem:[#allocation43_spill] sm:$0xff] }
 0x3f7   :  { %v2786_v20 = vmax.f32 %v5048_v34, %v5049_v47  ;;  %v5051_v42 = vadd.f32 %v2605_v41, %v7300_v51  ;;  %v5754_v51 = vld [vmem:[#allocation2 + $0x114] ss:$8 sps:$4 sm:$0xff]  }
 0x3f9   :  { %v2837_v21 = vadd.f32 %v6893_v39, %v2786_v20  ;;  %v2787_v57 = vmax.f32 %v5050_v48, %v5051_v42  ;;  %v5749_v48 = vld [vmem:[#allocation2 + $0x100] ss:$8 sps:$4 sm:$0xff]  }
 0x3fb   :  { %v2881_v4 = vmax.f32 %v2837_v21, 0.0  ;;  %v2838_v22 = vadd.f32 %v6893_v39, %v2787_v57  ;;  %v2609_v13 = vpop.f32.mrb[64].mxu0 }
 0x3fc   :  { %v5052_v5 = vadd.f32 %v2609_v13, %v7301_v28  ;;  %v2611_v44 = vpop.f32.mrb[65].mxu0  ;;  %v5752_v13 = vld [vmem:[#allocation2 + $0x110] ss:$8 sps:$4 sm:$0xff]  }
 0x3fd   :  { %v2909_v14 = vmax.f32 %v2879_v12, %v2881_v4  ;;  %v2882_v45 = vmax.f32 %v2838_v22, 0.0  ;;  %v5053_v35 = vadd.f32 %v2611_v44, %v7302_v6  ;;  %v2613_v46 = vpop.f32.mrb[66].mxu0  ;;  %v7309_v12 = vld [vmem:[#allocation44_spill] sm:$0xff]  ;;  %v7310_v44 = vld [vmem:[#allocation45_spill] sm:$0xff] }
 0x3fe   :  { %v5054_v24 = vadd.f32 %v2613_v46, %v7303_v36  ;;  %v2615_v23 = vpop.f32.mrb[67].mxu0 }
 0x3ff   :  { %v2910_v62 = vmax.f32 %v2880_v30, %v2882_v45  ;;  %v2788_v49 = vmax.f32 %v5052_v5, %v5053_v35  ;;  %v5055_v15 = vadd.f32 %v2615_v23, %v7304_v26  ;;  %v5757_v45 = vld [vmem:[#allocation2 + $0x124] ss:$8 sps:$4 sm:$0xff]   ;;  %v7311_v35 = vld [vmem:[#allocation46_spill] sm:$0xff]  ;;  %v5755_v23 = vld [vmem:[#allocation2 + $0x120] ss:$8 sps:$4 sm:$0xff]  }
 0x401   :  { %v2789_v31 = vmax.f32 %v5054_v24, %v5055_v15  ;;  %v7021_v1 = vpack.c.bf16 %v2910_v62, %v2909_v14  ;;  %v2839_v43 = vadd.f32 %v6893_v39, %v2788_v49  ;;  %v5760_v49 = vld [vmem:[#allocation2 + $0x134] ss:$8 sps:$4 sm:$0xff]  }
 0x403   :  { %v2619_v32 = vpop.f32.mrb[68].mxu0  ;;  %3134 = vmatmul.mubr.bf16.gmra.mrb[112].mxu1 %v7021_v1  ;;  %v2840_v41 = vadd.f32 %v6893_v39, %v2789_v31  ;;  %v2883_v42 = vmax.f32 %v2839_v43, 0.0  ;;  %v7313_v31 = vld [vmem:[#allocation48_spill] sm:$0xff] }
 0x404   :  { %v5056_v40 = vadd.f32 %v2619_v32, %v7305_v33  ;;  %v2621_v16 = vpop.f32.mrb[69].mxu0  ;;  %3252 = vmatprep.mubr.bf16.mxu1 %v5917_v0 }
 0x405   :  { %v5057_v18 = vadd.f32 %v2621_v16, %v7306_v17  ;;  %v2623_v27 = vpop.f32.mrb[70].mxu0  ;;  %v2884_v28 = vmax.f32 %v2840_v41, 0.0 }
 0x406   :  { %v5058_v34 = vadd.f32 %v2623_v27, %v7307_v9  ;;  %v2625_v2 = vpop.f32.mrb[71].mxu0  ;;  %v7314_v27 = vld [vmem:[#allocation49_spill] sm:$0xff] }
 0x407   :  { %v2790_v47 = vmax.f32 %v5056_v40, %v5057_v18  ;;  %v5059_v10 = vadd.f32 %v2625_v2, %v7308_v19  ;;  %v5758_v40 = vld [vmem:[#allocation2 + $0x130] ss:$8 sps:$4 sm:$0xff]   ;;  %v5763_v18 = vld [vmem:[#allocation2 + $0x144] ss:$8 sps:$4 sm:$0xff]   ;;  %v5761_v19 = vld [vmem:[#allocation2 + $0x140] ss:$8 sps:$4 sm:$0xff]  }
 0x409   :  { %v2841_v50 = vadd.f32 %v6893_v39, %v2790_v47  ;;  %v2791_v20 = vmax.f32 %v5058_v34, %v5059_v10  ;;  %v7315_v47 = vld [vmem:[#allocation50_spill] sm:$0xff] }
 0x40b   :  { %v2885_v11 = vmax.f32 %v2841_v50, 0.0  ;;  %v2842_v21 = vadd.f32 %v6893_v39, %v2791_v20  ;;  %v2629_v57 = vpop.f32.mrb[72].mxu0  ;;  %3253 = vmatmul.mubr.bf16.vlgmr.msra.gmra.mrb[88].mxu1 %v2917_v25 }
 0x40c   :  { %v5060_v4 = vadd.f32 %v2629_v57, %v7309_v12  ;;  %v2631_v22 = vpop.f32.mrb[73].mxu0  ;;  %3417 = vmatpush1.bf16.msra.mxu1 %v5749_v48  ;;  %3262 = vmatprep.mubr.bf16.mxu1 %v5917_v0  ;;  %v5764_v12 = vld [vmem:[#allocation2 + $0x150] ss:$8 sps:$4 sm:$0xff]  }
 0x40d   :  { %v2886_v5 = vmax.f32 %v2842_v21, 0.0  ;;  %v5061_v30 = vadd.f32 %v2631_v22, %v7310_v44  ;;  %v2633_v14 = vpop.f32.mrb[74].mxu0  ;;  %3418 = vmatprep.subr.bf16.mxu1 %v5754_v51  ;;  %v2911_v6 = vmax.f32 %v2883_v42, %v2885_v11  ;;  %v7316_v11 = vld [vmem:[#allocation51_spill] sm:$0xff] }
 0x40e   :  { %v5062_v46 = vadd.f32 %v2633_v14, %v7311_v35  ;;  %v2635_v36 = vpop.f32.mrb[75].mxu0 }
 0x40f   :  { %v2792_v29 = vmax.f32 %v5060_v4, %v5061_v30  ;;  %v5063_v25 = vadd.f32 %v2635_v36, %v7312_v37  ;;  %v2912_v24 = vmax.f32 %v2884_v28, %v2886_v5  ;;  %v5769_v5 = vld [vmem:[#allocation2 + $0x164] ss:$8 sps:$4 sm:$0xff]  }
 0x410   :  { %3419 = vmatpush1.bf16.msra.mxu1 %v5752_v13 }
 0x411   :  { %v2793_v62 = vmax.f32 %v5062_v46, %v5063_v25  ;;  %3420 = vmatprep.subr.bf16.mxu1 %v5757_v45  ;;  %v7041_v26 = vpack.c.bf16 %v2912_v24, %v2911_v6  ;;  %v2843_v2 = vadd.f32 %v6893_v39, %v2792_v29  ;;  %v5767_v46 = vld [vmem:[#allocation2 + $0x160] ss:$8 sps:$4 sm:$0xff]   ;;  %v5772_v29 = vld [vmem:[#allocation2 + $0x174] ss:$8 sps:$4 sm:$0xff]  }
 0x413   :  { %v2639_v15 = vpop.f32.mrb[76].mxu0  ;;  %3263 = vmatmul.mubr.bf16.gmra.mrb[92].mxu1 %v6925_v7  ;;  %v2844_v10 = vadd.f32 %v6893_v39, %v2793_v62  ;;  %v2887_v50 = vmax.f32 %v2843_v2, 0.0  ;;  %v5775_v62 = vld [vmem:[#allocation2 + $0x184] ss:$8 sps:$4 sm:$0xff]   ;;  %v5778_v2 = vld [vmem:[#allocation2 + $0x194] ss:$8 sps:$4 sm:$0xff]  }
 0x414   :  { %v5064_v32 = vadd.f32 %v2639_v15, %v7313_v31  ;;  %v2641_v33 = vpop.f32.mrb[77].mxu0  ;;  %3272 = vmatprep.mubr.bf16.mxu1 %v5917_v0  ;;  %3421 = vmatpush1.bf16.msra.mxu1 %v5755_v23 }
 0x415   :  { %v5065_v16 = vadd.f32 %v2641_v33, %v6798_v53  ;;  %v2643_v17 = vpop.f32.mrb[78].mxu0  ;;  %3422 = vmatprep.subr.bf16.mxu1 %v5760_v49  ;;  %v5766_v53 = vld [vmem:[#allocation2 + $0x154] ss:$8 sps:$4 sm:$0xff]   ;;  %v2888_v4 = vmax.f32 %v2844_v10, 0.0  ;;  %v5782_v10 = vld [vmem:[#allocation2 + $0x1b0] ss:$8 sps:$4 sm:$0xff]  }
 0x416   :  { %v5066_v9 = vadd.f32 %v2643_v17, %v7314_v27  ;;  %v2645_v34 = vpop.f32.mrb[79].mxu0 }
 0x417   :  { %v2794_v43 = vmax.f32 %v5064_v32, %v5065_v16  ;;  %v5067_v7 = vadd.f32 %v2645_v34, %v7315_v47  ;;  %v5781_v47 = vld [vmem:[#allocation2 + $0x1a4] ss:$8 sps:$4 sm:$0xff]  }
 0x418   :  { %3423 = vmatpush1.bf16.msra.mxu1 %v5758_v40 }
 0x419   :  { %v2845_v48 = vadd.f32 %v6893_v39, %v2794_v43  ;;  %v2795_v41 = vmax.f32 %v5066_v9, %v5067_v7  ;;  %3424 = vmatprep.subr.bf16.mxu1 %v5763_v18  ;;  %v5776_v43 = vld [vmem:[#allocation2 + $0x190] ss:$8 sps:$4 sm:$0xff]   ;;  %v5779_v7 = vld [vmem:[#allocation2 + $0x1a0] ss:$8 sps:$4 sm:$0xff]  }
 0x41b   :  { %v2889_v20 = vmax.f32 %v2845_v48, 0.0  ;;  %v2846_v51 = vadd.f32 %v6893_v39, %v2795_v41  ;;  %v2649_v42 = vpop.f32.mrb[80].mxu0  ;;  %3273 = vmatmul.mubr.bf16.gmra.mrb[96].mxu1 %v6941_v63  ;;  %v5787_v48 = vld [vmem:[#allocation2 + $0x1c4] ss:$8 sps:$4 sm:$0xff]   ;;  %v5790_v41 = vld [vmem:[#allocation2 + $0x1d4] ss:$8 sps:$4 sm:$0xff]  }
 0x41c   :  { %v5068_v21 = vadd.f32 %v2649_v42, %v7316_v11  ;;  %v2651_v57 = vpop.f32.mrb[81].mxu0  ;;  %3282 = vmatprep.mubr.bf16.mxu1 %v5917_v0  ;;  %3425 = vmatpush1.bf16.msra.mxu1 %v5761_v19  ;;  %v5784_v19 = vld [vmem:[#allocation2 + $0x1b4] ss:$8 sps:$4 sm:$0xff]   ;;  %v5794_v42 = vld [vmem:[#allocation2 + $0x1f0] ss:$8 sps:$4 sm:$0xff]  }
 0x41d   :  { %v2890_v22 = vmax.f32 %v2846_v51, 0.0  ;;  %v5069_v13 = vadd.f32 %v2651_v57, %v6811_v54  ;;  %v2653_v28 = vpop.f32.mrb[82].mxu0  ;;  %3426 = vmatprep.subr.bf16.mxu1 %v5766_v53  ;;  %v2913_v44 = vmax.f32 %v2887_v50, %v2889_v20  ;;  %v5788_v53 = vld [vmem:[#allocation2 + $0x1d0] ss:$8 sps:$4 sm:$0xff]   ;;  %v5793_v50 = vld [vmem:[#allocation2 + $0x1e4] ss:$8 sps:$4 sm:$0xff]  }
 0x41e   :  { %v5070_v30 = vadd.f32 %v2653_v28, %v6813_v61  ;;  %v2655_v14 = vpop.f32.mrb[83].mxu0  ;;  %v5770_v61 = vld [vmem:[#allocation2 + $0x170] ss:$8 sps:$4 sm:$0xff]   ;;  %v5791_v20 = vld [vmem:[#allocation2 + $0x1e0] ss:$8 sps:$4 sm:$0xff]  }
 0x41f   :  { %v2796_v45 = vmax.f32 %v5068_v21, %v5069_v13  ;;  %v5071_v6 = vadd.f32 %v2655_v14, %v6815_v60  ;;  %v2914_v35 = vmax.f32 %v2888_v4, %v2890_v22  ;;  %v5796_v51 = vld [vmem:[#allocation2 + $0x1f4] ss:$8 sps:$4 sm:$0xff]   ;;  %v5799_v11 = vld [vmem:[#allocation2 + $0x204] ss:$8 sps:$4 sm:$0xff]   ;;  %v5797_v21 = vld [vmem:[#allocation2 + $0x200] ss:$8 sps:$4 sm:$0xff]  }
 0x420   :  { %3427 = vmatpush1.bf16.msra.mxu1 %v5764_v12  ;;  %v5802_v57 = vld [vmem:[#allocation2 + $0x214] ss:$8 sps:$4 sm:$0xff]   ;;  %v5800_v12 = vld [vmem:[#allocation2 + $0x210] ss:$8 sps:$4 sm:$0xff]   ;;  %v5805_v4 = vld [vmem:[#allocation2 + $0x224] ss:$8 sps:$4 sm:$0xff]  }
 0x421   :  { %v2797_v36 = vmax.f32 %v5070_v30, %v5071_v6  ;;  %3428 = vmatprep.subr.bf16.mxu1 %v5769_v5  ;;  %v7059_v37 = vpack.c.bf16 %v2914_v35, %v2913_v44  ;;  %v2847_v31 = vadd.f32 %v6893_v39, %v2796_v45  ;;  %v5803_v22 = vld [vmem:[#allocation2 + $0x220] ss:$8 sps:$4 sm:$0xff]   ;;  %v5808_v13 = vld [vmem:[#allocation2 + $0x234] ss:$8 sps:$4 sm:$0xff]   ;;  %v5806_v28 = vld [vmem:[#allocation2 + $0x230] ss:$8 sps:$4 sm:$0xff]  }
 0x422   :  { %v5811_v5 = vld [vmem:[#allocation2 + $0x244] ss:$8 sps:$4 sm:$0xff]   ;;  %v5814_v44 = vld [vmem:[#allocation2 + $0x254] ss:$8 sps:$4 sm:$0xff]   ;;  %v5812_v30 = vld [vmem:[#allocation2 + $0x250] ss:$8 sps:$4 sm:$0xff]  }
 0x423   :  { %v2659_v25 = vpop.f32.mrb[84].mxu0  ;;  %3283 = vmatmul.mubr.bf16.gmra.mrb[100].mxu1 %v6957_v58  ;;  %v2891_v17 = vmax.f32 %v2847_v31, 0.0  ;;  %v5817_v14 = vld [vmem:[#allocation2 + $0x264] ss:$8 sps:$4 sm:$0xff]   ;;  %v5815_v45 = vld [vmem:[#allocation2 + $0x260] ss:$8 sps:$4 sm:$0xff]  }
 0x424   :  { %v5072_v54 = vadd.f32 %v2659_v25, %v6819_v52  ;;  %v2661_v24 = vpop.f32.mrb[85].mxu0  ;;  %3292 = vmatprep.mubr.bf16.mxu1 %v5917_v0  ;;  %3429 = vmatpush1.bf16.msra.mxu1 %v5767_v46  ;;  %v2848_v52 = vadd.f32 %v6893_v39, %v2797_v36  ;;  %v5820_v6 = vld [vmem:[#allocation2 + $0x274] ss:$8 sps:$4 sm:$0xff]   ;;  %v5818_v35 = vld [vmem:[#allocation2 + $0x270] ss:$8 sps:$4 sm:$0xff]   ;;  %v5821_v46 = vld [vmem:[#allocation4] sm:$0xff]  }
 0x425   :  { %v5073_v60 = vadd.f32 %v2661_v24, %v6822_v59  ;;  %v2663_v23 = vpop.f32.mrb[86].mxu0  ;;  %3430 = vmatprep.subr.bf16.mxu1 %v5772_v29  ;;  %v5918_v36 = vmov 0.0   ;;  %v5826_v24 = vld [vmem:[#allocation4 + $0x28] sm:$0xff]  }
 0x426   :  { %v5074_v49 = vadd.f32 %v2663_v23, %v6824_v56  ;;  %v2665_v15 = vpop.f32.mrb[87].mxu0  ;;  %v2892_v56 = vmax.f32 %v2848_v52, 0.0 }
 0x427   :  { %v2798_v32 = vmax.f32 %v5072_v54, %v5073_v60  ;;  %v5075_v33 = vadd.f32 %v2665_v15, %v6826_v55 }
 0x428   :  { %3431 = vmatpush1.bf16.msra.mxu1 %v5770_v61 }
 0x429   :  { %v2849_v40 = vadd.f32 %v6893_v39, %v2798_v32  ;;  %v2799_v16 = vmax.f32 %v5074_v49, %v5075_v33  ;;  %3636 = vmatprep.subr.bf16.mxu1 %v5775_v62  ;;  %v5827_v49 = vld [vmem:[#allocation4 + $0x30] sm:$0xff]  }
 0x42b   :  { %v2893_v59 = vmax.f32 %v2849_v40, 0.0  ;;  %v2850_v18 = vadd.f32 %v6893_v39, %v2799_v16  ;;  %3293 = vmatmul.mubr.bf16.gmra.mrb[104].mxu1 %v6973_v3  ;;  %v5773_v39 = vld [vmem:[#allocation2 + $0x180] ss:$8 sps:$4 sm:$0xff]  }
 0x42c   :  { %3302 = vmatprep.mubr.bf16.mxu1 %v5917_v0 }
 0x42d   :  { %v2894_v27 = vmax.f32 %v2850_v18, 0.0  ;;  %v7073_v9 = vmax.f32 %v2891_v17, %v2893_v59 }
 0x42f   :  { %v7075_v55 = vmax.f32 %v2892_v56, %v2894_v27 }
 0x431   :  { %v2927_v34 = vpack.c.bf16 %v7075_v55, %v7073_v9  ;;  %v7140_v55 = vld [vmem:[%s7223_s4] ss:$0 sm:$0xff] }
 0x433   :  { %3303 = vmatmul.mubr.bf16.gmra.mrb[108].mxu1 %v6989_v38 }
 0x434   :  { %3312 = vmatprep.mubr.bf16.mxu1 %v5917_v0 }
 0x43b   :  { %3313 = vmatmul.mubr.bf16.gmra.mrb[116].mxu1 %v7005_v8 }
 0x43c   :  { %3448 = vmatprep.mubr.bf16.mxu1 %v5917_v0 }
 0x443   :  { %3449 = vmatmul.mubr.bf16.vlgmr.msra.gmra.mrb[88].mxu1 %v6941_v63  ;;  %v5785_v63 = vld [vmem:[#allocation2 + $0x1c0] ss:$8 sps:$4 sm:$0xff]  }
 0x444   :  { %3637 = vmatpush1.bf16.msra.mxu1 %v5773_v39  ;;  %3458 = vmatprep.mubr.bf16.mxu1 %v5917_v0 }
 0x445   :  { %3638 = vmatprep.subr.bf16.mxu1 %v5778_v2 }
 0x448   :  { %3639 = vmatpush1.bf16.msra.mxu1 %v5776_v43 }
 0x449   :  { %3640 = vmatprep.subr.bf16.mxu1 %v5781_v47 }
 0x44b   :  { %3459 = vmatmul.mubr.bf16.gmra.mrb[92].mxu1 %v6957_v58 }
 0x44c   :  { %3468 = vmatprep.mubr.bf16.mxu1 %v5917_v0  ;;  %3641 = vmatpush1.bf16.msra.mxu1 %v5779_v7 }
 0x44d   :  { %3642 = vmatprep.subr.bf16.mxu1 %v5784_v19 }
 0x450   :  { %3643 = vmatpush1.bf16.msra.mxu1 %v5782_v10 }
 0x451   :  { %3644 = vmatprep.subr.bf16.mxu1 %v5787_v48 }
 0x453   :  { %3469 = vmatmul.mubr.bf16.gmra.mrb[96].mxu1 %v6973_v3 }
 0x454   :  { %3478 = vmatprep.mubr.bf16.mxu1 %v5917_v0  ;;  %3645 = vmatpush1.bf16.msra.mxu1 %v5785_v63 }
 0x455   :  { %3646 = vmatprep.subr.bf16.mxu1 %v5790_v41 }
 0x458   :  { %3647 = vmatpush1.bf16.msra.mxu1 %v5788_v53 }
 0x459   :  { %3648 = vmatprep.subr.bf16.mxu1 %v5793_v50 }
 0x45b   :  { %3479 = vmatmul.mubr.bf16.gmra.mrb[100].mxu1 %v6989_v38 }
 0x45c   :  { %3488 = vmatprep.mubr.bf16.mxu1 %v5917_v0  ;;  %3649 = vmatpush1.bf16.msra.mxu1 %v5791_v20 }
 0x45d   :  { %3650 = vmatprep.subr.bf16.mxu1 %v5796_v51 }
 0x460   :  { %3651 = vmatpush1.bf16.msra.mxu1 %v5794_v42 }
 0x461   :  { %3856 = vmatprep.subr.bf16.mxu1 %v5799_v11 }
 0x463   :  { %3489 = vmatmul.mubr.bf16.gmra.mrb[104].mxu1 %v7005_v8 }
 0x464   :  { %3498 = vmatprep.mubr.bf16.mxu1 %v5917_v0 }
 0x46b   :  { %3499 = vmatmul.mubr.bf16.gmra.mrb[108].mxu1 %v7021_v1 }
 0x46c   :  { %3508 = vmatprep.mubr.bf16.mxu1 %v5917_v0 }
 0x473   :  { %3509 = vmatmul.mubr.bf16.gmra.mrb[120].mxu1 %v7041_v26 }
 0x474   :  { %3668 = vmatprep.mubr.bf16.mxu1 %v5917_v0 }
 0x47b   :  { %3669 = vmatmul.mubr.bf16.vlgmr.msra.gmra.mrb[88].mxu1 %v6957_v58  ;;  %v5809_v58 = vld [vmem:[#allocation2 + $0x240] ss:$8 sps:$4 sm:$0xff]  }
 0x47c   :  { %3857 = vmatpush1.bf16.msra.mxu1 %v5797_v21  ;;  %3678 = vmatprep.mubr.bf16.mxu1 %v5917_v0 }
 0x47d   :  { %3858 = vmatprep.subr.bf16.mxu1 %v5802_v57 }
 0x480   :  { %3859 = vmatpush1.bf16.msra.mxu1 %v5800_v12 }
 0x481   :  { %3860 = vmatprep.subr.bf16.mxu1 %v5805_v4 }
 0x483   :  { %3679 = vmatmul.mubr.bf16.gmra.mrb[92].mxu1 %v6973_v3 }
 0x484   :  { %3688 = vmatprep.mubr.bf16.mxu1 %v5917_v0  ;;  %3861 = vmatpush1.bf16.msra.mxu1 %v5803_v22  ;;  %v5829_v22 = vld [vmem:[#allocation4 + $0x40] sm:$0xff]  }
 0x485   :  { %3862 = vmatprep.subr.bf16.mxu1 %v5808_v13 }
 0x488   :  { %3863 = vmatpush1.bf16.msra.mxu1 %v5806_v28 }
 0x489   :  { %3864 = vmatprep.subr.bf16.mxu1 %v5811_v5  ;;  %v5830_v5 = vld [vmem:[#allocation4 + $0x48] sm:$0xff]  }
 0x48b   :  { %3689 = vmatmul.mubr.bf16.gmra.mrb[96].mxu1 %v6989_v38 }
 0x48c   :  { %3698 = vmatprep.mubr.bf16.mxu1 %v5917_v0  ;;  %3865 = vmatpush1.bf16.msra.mxu1 %v5809_v58 }
 0x48d   :  { %3866 = vmatprep.subr.bf16.mxu1 %v5814_v44 }
 0x490   :  { %3867 = vmatpush1.bf16.msra.mxu1 %v5812_v30 }
 0x491   :  { %3868 = vmatprep.subr.bf16.mxu1 %v5817_v14 }
 0x493   :  { %3699 = vmatmul.mubr.bf16.gmra.mrb[100].mxu1 %v7005_v8 }
 0x494   :  { %3708 = vmatprep.mubr.bf16.mxu1 %v5917_v0  ;;  %3869 = vmatpush1.bf16.msra.mxu1 %v5815_v45 }
 0x495   :  { %3870 = vmatprep.subr.bf16.mxu1 %v5820_v6 }
 0x498   :  { %3871 = vmatpush1.bf16.msra.mxu1 %v5818_v35  ;;  %v5831_v35 = vld [vmem:[#allocation4 + $0x50] sm:$0xff]  }
 0x499   :  { %4904 = vmatprep.subr.bf16.mxu1 %v5918_v36 }
 0x49b   :  { %3709 = vmatmul.mubr.bf16.gmra.mrb[104].mxu1 %v7021_v1 }
 0x49c   :  { %3718 = vmatprep.mubr.bf16.mxu1 %v5917_v0 }
 0x4a3   :  { %3719 = vmatmul.mubr.bf16.gmra.mrb[108].mxu1 %v7041_v26 }
 0x4a4   :  { %3728 = vmatprep.mubr.bf16.mxu1 %v5917_v0 }
 0x4ab   :  { %3729 = vmatmul.mubr.bf16.gmra.mrb[124].mxu1 %v7059_v37 }
 0x4ac   :  { %3888 = vmatprep.mubr.bf16.mxu1 %v5917_v0 }
 0x4b3   :  { %3889 = vmatmul.mubr.bf16.vlgmr.msra.gmra.mrb[88].mxu1 %v6973_v3  ;;  %v5822_v3 = vld [vmem:[#allocation4 + $0x8] sm:$0xff]  }
 0x4b4   :  { %3898 = vmatprep.mubr.bf16.mxu1 %v5917_v0  ;;  %4905 = vmatpush3.bf16.msra.mxu1 %v5821_v46 }
 0x4b5   :  { %4906 = vmatprep.subr.bf16.mxu1 %v5918_v36 }
 0x4b8   :  { %4907 = vmatpush3.bf16.msra.mxu1 %v5822_v3 }
 0x4b9   :  { %4908 = vmatprep.subr.bf16.mxu1 %v5918_v36 }
 0x4bb   :  { %3899 = vmatmul.mubr.bf16.gmra.mrb[92].mxu1 %v6989_v38  ;;  %v5823_v38 = vld [vmem:[#allocation4 + $0x10] sm:$0xff]  }
 0x4bc   :  { %3908 = vmatprep.mubr.bf16.mxu1 %v5917_v0  ;;  %4909 = vmatpush3.bf16.msra.mxu1 %v5823_v38 }
 0x4bd   :  { %4910 = vmatprep.subr.bf16.mxu1 %v5918_v36 }
 0x4c3   :  { %3909 = vmatmul.mubr.bf16.gmra.mrb[96].mxu1 %v7005_v8  ;;  %v5824_v8 = vld [vmem:[#allocation4 + $0x18] sm:$0xff]  }
 0x4c4   :  { %3918 = vmatprep.mubr.bf16.mxu1 %v5917_v0  ;;  %4911 = vmatpush3.bf16.msra.mxu1 %v5824_v8 }
 0x4c5   :  { %4912 = vmatprep.subr.bf16.mxu1 %v5918_v36 }
 0x4cb   :  { %3919 = vmatmul.mubr.bf16.gmra.mrb[100].mxu1 %v7021_v1 }
 0x4cc   :  { %3928 = vmatprep.mubr.bf16.mxu1 %v5917_v0 }
 0x4d3   :  { %3929 = vmatmul.mubr.bf16.gmra.mrb[104].mxu1 %v7041_v26  ;;  %v5825_v26 = vld [vmem:[#allocation4 + $0x20] sm:$0xff]  }
 0x4d4   :  { %3938 = vmatprep.mubr.bf16.mxu1 %v5917_v0  ;;  %4913 = vmatpush3.bf16.msra.mxu1 %v5825_v26 }
 0x4d5   :  { %4914 = vmatprep.subr.bf16.mxu1 %v5918_v36 }
 0x4d6   :  { %v3135_v29 = vpop.f32.mrb[112].mxu1 }
 0x4d7   :  { %v3136_v1 = vpop.f32.mrb[113].mxu1 }
 0x4d8   :  { %v3137_v25 = vpop.f32.mrb[114].mxu1  ;;  %4915 = vmatpush3.bf16.msra.mxu1 %v5826_v24 }
 0x4d9   :  { %v3138_v54 = vpop.f32.mrb[115].mxu1  ;;  %4916 = vmatprep.subr.bf16.mxu1 %v5918_v36  ;;  %v5832_v25 = vld [vmem:[#allocation4 + $0x58] sm:$0xff]  }
 0x4db   :  { %3939 = vmatmul.mubr.bf16.gmra.mrb[108].mxu1 %v7059_v37 }
 0x4dc   :  { %3948 = vmatprep.mubr.bf16.mxu1 %v5917_v0  ;;  %4917 = vmatpush3.bf16.msra.mxu1 %v5827_v49  ;;  %v5828_v0 = vld [vmem:[#allocation4 + $0x38] sm:$0xff]  }
 0x4dd   :  { %4918 = vmatprep.subr.bf16.mxu1 %v5918_v36 }
 0x4e0   :  { %4919 = vmatpush3.bf16.msra.mxu1 %v5828_v0 }
 0x4e1   :  { %4924 = vmatprep.subr.bf16.mxu1 %v5918_v36 }
 0x4e3   :  { %3949 = vmatmul.mubr.bf16.gmra.mrb[128].mxu1 %v2927_v34 }
 0x4e4   :  { %4920 = vmatprep.mubr.msk.bf16.mxu1 %vm5919_vm2, %v5918_v36 }
 0x50e   :  { %v3314_v61 = vpop.f32.mrb[116].mxu1 }
 0x50f   :  { %v3315_v60 = vpop.f32.mrb[117].mxu1 }
 0x510   :  { %v3316_v23 = vpop.f32.mrb[118].mxu1 }
 0x511   :  { %v3317_v62 = vpop.f32.mrb[119].mxu1 }
 0x546   :  { %v3510_v37 = vpop.f32.mrb[120].mxu1 }
 0x547   :  { %v3511_v15 = vpop.f32.mrb[121].mxu1  ;;  %v5833_v37 = vld [vmem:[#allocation4 + $0x60] sm:$0xff]  }
 0x548   :  { %v3512_v31 = vpop.f32.mrb[122].mxu1 }
 0x549   :  { %v3513_v32 = vpop.f32.mrb[123].mxu1 }
 0x57e   :  { %v3730_v33 = vpop.f32.mrb[124].mxu1 }
 0x57f   :  { %v3731_v52 = vpop.f32.mrb[125].mxu1 }
 0x580   :  { %v3732_v40 = vpop.f32.mrb[126].mxu1  ;;  %v5834_v52 = vld [vmem:[#allocation4 + $0x68] sm:$0xff]  }
 0x581   :  { %v3733_v16 = vpop.f32.mrb[127].mxu1 }
 0x586   :  { %v3890_v17 = vpop.f32.mrb[88].mxu1 }
 0x587   :  { %v3892_v59 = vpop.f32.mrb[89].mxu1 }
 0x588   :  { %v3979_v18 = vmax.f32 %v3890_v17, %v3892_v59  ;;  %v3894_v56 = vpop.f32.mrb[90].mxu1 }
 0x589   :  { %v3896_v27 = vpop.f32.mrb[91].mxu1 }
 0x58a   :  { %v3980_v9 = vmax.f32 %v3894_v56, %v3896_v27  ;;  %v3998_v2 = vadd.f32 %v7140_v55, %v3979_v18  ;;  %v5835_v56 = vld [vmem:[#allocation4 + $0x70] sm:$0xff]  }
 0x58c   :  { %v3999_v19 = vadd.f32 %v7140_v55, %v3980_v9  ;;  %v4010_v63 = vmax.f32 %v3998_v2, 0.0 }
 0x58e   :  { %v3900_v34 = vpop.f32.mrb[92].mxu1  ;;  %v4011_v50 = vmax.f32 %v3999_v19, 0.0 }
 0x58f   :  { %v3902_v39 = vpop.f32.mrb[93].mxu1 }
 0x590   :  { %v3981_v43 = vmax.f32 %v3900_v34, %v3902_v39  ;;  %v3904_v47 = vpop.f32.mrb[94].mxu1 }
 0x591   :  { %v3906_v7 = vpop.f32.mrb[95].mxu1 }
 0x592   :  { %v4000_v10 = vadd.f32 %v7140_v55, %v3981_v43  ;;  %v3982_v48 = vmax.f32 %v3904_v47, %v3906_v7  ;;  %v5836_v43 = vld [vmem:[#allocation4 + $0x78] sm:$0xff]  }
 0x594   :  { %v4012_v41 = vmax.f32 %v4000_v10, 0.0  ;;  %v4001_v53 = vadd.f32 %v7140_v55, %v3982_v48 }
 0x596   :  { %v4022_v20 = vmax.f32 %v4010_v63, %v4012_v41  ;;  %v4013_v51 = vmax.f32 %v4001_v53, 0.0  ;;  %v3910_v42 = vpop.f32.mrb[96].mxu1 }
 0x597   :  { %v3912_v11 = vpop.f32.mrb[97].mxu1 }
 0x598   :  { %v4023_v21 = vmax.f32 %v4011_v50, %v4013_v51  ;;  %v3983_v57 = vmax.f32 %v3910_v42, %v3912_v11  ;;  %v3914_v12 = vpop.f32.mrb[98].mxu1  ;;  %v5837_v50 = vld [vmem:[#allocation4 + $0x80] sm:$0xff]   ;;  %v5839_v51 = vld [vmem:[#allocation4 + $0x90] sm:$0xff]   ;;  %v5840_v42 = vld [vmem:[#allocation4 + $0x98] sm:$0xff]  }
 0x599   :  { %v3916_v4 = vpop.f32.mrb[99].mxu1  ;;  %v5841_v11 = vld [vmem:[#allocation4 + $0xa0] sm:$0xff]  }
 0x59a   :  { %v4028_v13 = vpack.c.bf16 %v4023_v21, %v4022_v20  ;;  %v3984_v28 = vmax.f32 %v3914_v12, %v3916_v4  ;;  %v4002_v30 = vadd.f32 %v7140_v55, %v3983_v57  ;;  %v5842_v21 = vld [vmem:[#allocation4 + $0xa8] sm:$0xff]   ;;  %v5843_v57 = vld [vmem:[#allocation4 + $0xb0] sm:$0xff]   ;;  %v5844_v12 = vld [vmem:[#allocation4 + $0xb8] sm:$0xff]  }
 0x59b   :  { %v5845_v4 = vld [vmem:[%s7226_s7] sm:$0xff]  }
 0x59c   :  { %4921 = vmatmul.mubr.bf16.vlgmr.msra.gmra.mrb[132].mxu1 %v4028_v13  ;;  %v4003_v46 = vadd.f32 %v7140_v55, %v3984_v28  ;;  %v4014_v8 = vmax.f32 %v4002_v30, 0.0  ;;  %v5847_v13 = vld [vmem:[%s7226_s7 + $0x10] sm:$0xff]   ;;  %v5848_v28 = vld [vmem:[%s7226_s7 + $0x18] sm:$0xff]  }
 0x59d   :  { %4925 = vmatpush3.bf16.msra.mxu1 %v5829_v22  ;;  %4940 = vmatprep.mubr.msk.bf16.mxu1 %vm5919_vm2, %v5918_v36  ;;  %v5846_v22 = vld [vmem:[%s7226_s7 + $0x8] sm:$0xff]   ;;  %v5852_v30 = vld [vmem:[%s7226_s7 + $0x38] sm:$0xff]  }
 0x59e   :  { %v3920_v58 = vpop.f32.mrb[100].mxu1  ;;  %4926 = vmatprep.subr.bf16.mxu1 %v5918_v36  ;;  %v4015_v54 = vmax.f32 %v4003_v46, 0.0 }
 0x59f   :  { %v3922_v44 = vpop.f32.mrb[101].mxu1 }
 0x5a0   :  { %v3985_v14 = vmax.f32 %v3920_v58, %v3922_v44  ;;  %v3924_v45 = vpop.f32.mrb[102].mxu1  ;;  %v5850_v58 = vld [vmem:[%s7226_s7 + $0x28] sm:$0xff]   ;;  %v5851_v44 = vld [vmem:[%s7226_s7 + $0x30] sm:$0xff]  }
 0x5a1   :  { %4927 = vmatpush3.bf16.msra.mxu1 %v5830_v5  ;;  %v3926_v6 = vpop.f32.mrb[103].mxu1  ;;  %v5849_v5 = vld [vmem:[%s7226_s7 + $0x20] sm:$0xff]  }
 0x5a2   :  { %v4004_v3 = vadd.f32 %v7140_v55, %v3985_v14  ;;  %v3986_v38 = vmax.f32 %v3924_v45, %v3926_v6  ;;  %4928 = vmatprep.subr.bf16.mxu1 %v5918_v36  ;;  %v4842_v14 = vld [vmem:[%s7225_s6] ss:$0 sm:$0xff] }
 0x5a4   :  { %v4016_v29 = vmax.f32 %v4004_v3, 0.0  ;;  %v4005_v1 = vadd.f32 %v7140_v55, %v3986_v38 }
 0x5a5   :  { %4929 = vmatpush3.bf16.msra.mxu1 %v5831_v35 }
 0x5a6   :  { %v4024_v26 = vmax.f32 %v4014_v8, %v4016_v29  ;;  %v4017_v24 = vmax.f32 %v4005_v1, 0.0  ;;  %v3930_v61 = vpop.f32.mrb[104].mxu1  ;;  %4930 = vmatprep.subr.bf16.mxu1 %v5918_v36 }
 0x5a7   :  { %v3932_v60 = vpop.f32.mrb[105].mxu1 }
 0x5a8   :  { %v4025_v23 = vmax.f32 %v4015_v54, %v4017_v24  ;;  %v3987_v62 = vmax.f32 %v3930_v61, %v3932_v60  ;;  %v3934_v49 = vpop.f32.mrb[106].mxu1 }
 0x5a9   :  { %4931 = vmatpush3.bf16.msra.mxu1 %v5832_v25  ;;  %v3936_v0 = vpop.f32.mrb[107].mxu1  ;;  %v4859_v25 = vld [vmem:[%s7227_s8] ss:$0 sm:$0xff] }
 0x5aa   :  { %v4029_v15 = vpack.c.bf16 %v4025_v23, %v4024_v26  ;;  %v4006_v31 = vadd.f32 %v7140_v55, %v3987_v62  ;;  %v3988_v32 = vmax.f32 %v3934_v49, %v3936_v0  ;;  %4932 = vmatprep.subr.bf16.mxu1 %v5918_v36 }
 0x5ac   :  { %v4007_v33 = vadd.f32 %v7140_v55, %v3988_v32  ;;  %v4018_v34 = vmax.f32 %v4006_v31, 0.0 }
 0x5ad   :  { %4933 = vmatpush3.bf16.msra.mxu1 %v5833_v37 }
 0x5ae   :  { %v3940_v40 = vpop.f32.mrb[108].mxu1  ;;  %4934 = vmatprep.subr.bf16.mxu1 %v5918_v36  ;;  %v4019_v47 = vmax.f32 %v4007_v33, 0.0 }
 0x5af   :  { %v3942_v16 = vpop.f32.mrb[109].mxu1 }
 0x5b0   :  { %v3989_v17 = vmax.f32 %v3940_v40, %v3942_v16  ;;  %v3944_v59 = vpop.f32.mrb[110].mxu1 }
 0x5b1   :  { %4935 = vmatpush3.bf16.msra.mxu1 %v5834_v52  ;;  %v3946_v18 = vpop.f32.mrb[111].mxu1 }
 0x5b2   :  { %v4008_v27 = vadd.f32 %v7140_v55, %v3989_v17  ;;  %v3990_v9 = vmax.f32 %v3944_v59, %v3946_v18  ;;  %4936 = vmatprep.subr.bf16.mxu1 %v5918_v36 }
 0x5b4   :  { %v4020_v39 = vmax.f32 %v4008_v27, 0.0  ;;  %v4009_v2 = vadd.f32 %v7140_v55, %v3990_v9  ;;  %v5838_v55 = vld [vmem:[#allocation4 + $0x88] sm:$0xff]  }
 0x5b5   :  { %4937 = vmatpush3.bf16.msra.mxu1 %v5835_v56 }
 0x5b6   :  { %v4026_v7 = vmax.f32 %v4018_v34, %v4020_v39  ;;  %v4021_v19 = vmax.f32 %v4009_v2, 0.0  ;;  %v3950_v10 = vpop.f32.mrb[128].mxu1  ;;  %4938 = vmatprep.subr.bf16.mxu1 %v5918_v36 }
 0x5b7   :  { %v3951_v48 = vpop.f32.mrb[129].mxu1 }
 0x5b8   :  { %v4027_v63 = vmax.f32 %v4019_v47, %v4021_v19  ;;  %v3952_v41 = vpop.f32.mrb[130].mxu1 }
 0x5b9   :  { %4939 = vmatpush3.bf16.msra.mxu1 %v5836_v43  ;;  %v3953_v53 = vpop.f32.mrb[131].mxu1 }
 0x5ba   :  { %v4030_v20 = vpack.c.bf16 %v4027_v63, %v4026_v7  ;;  %4944 = vmatprep.subr.bf16.mxu1 %v5918_v36 }
 0x5bc   :  { %4941 = vmatmul.mubr.bf16.vlgmr.msra.gmra.mrb[132].mxu1 %v4029_v15 }
 0x5bd   :  { %4945 = vmatpush3.bf16.msra.mxu1 %v5837_v50  ;;  %4960 = vmatprep.mubr.msk.bf16.mxu1 %vm5919_vm2, %v5918_v36 }
 0x5be   :  { %4946 = vmatprep.subr.bf16.mxu1 %v5918_v36 }
 0x5c1   :  { %4947 = vmatpush3.bf16.msra.mxu1 %v5838_v55 }
 0x5c2   :  { %4948 = vmatprep.subr.bf16.mxu1 %v5918_v36 }
 0x5c5   :  { %4949 = vmatpush3.bf16.msra.mxu1 %v5839_v51 }
 0x5c6   :  { %4950 = vmatprep.subr.bf16.mxu1 %v5918_v36 }
 0x5c9   :  { %4951 = vmatpush3.bf16.msra.mxu1 %v5840_v42 }
 0x5ca   :  { %4952 = vmatprep.subr.bf16.mxu1 %v5918_v36 }
 0x5cd   :  { %4953 = vmatpush3.bf16.msra.mxu1 %v5841_v11 }
 0x5ce   :  { %4954 = vmatprep.subr.bf16.mxu1 %v5918_v36 }
 0x5d1   :  { %4955 = vmatpush3.bf16.msra.mxu1 %v5842_v21 }
 0x5d2   :  { %4956 = vmatprep.subr.bf16.mxu1 %v5918_v36 }
 0x5d5   :  { %4957 = vmatpush3.bf16.msra.mxu1 %v5843_v57 }
 0x5d6   :  { %4958 = vmatprep.subr.bf16.mxu1 %v5918_v36 }
 0x5d9   :  { %4959 = vmatpush3.bf16.msra.mxu1 %v5844_v12 }
 0x5da   :  { %4964 = vmatprep.subr.bf16.mxu1 %v5918_v36 }
 0x5dc   :  { %4961 = vmatmul.mubr.bf16.vlgmr.msra.gmra.mrb[132].mxu1 %v4030_v20 }
 0x5dd   :  { %4965 = vmatpush3.bf16.msra.mxu1 %v5845_v4  ;;  %4980 = vmatprep.mubr.msk.bf16.mxu1 %vm5919_vm2, %v5918_v36 }
 0x5de   :  { %4966 = vmatprep.subr.bf16.mxu1 %v5918_v36 }
 0x5e1   :  { %4967 = vmatpush3.bf16.msra.mxu1 %v5846_v22 }
 0x5e2   :  { %4968 = vmatprep.subr.bf16.mxu1 %v5918_v36 }
 0x5e5   :  { %4969 = vmatpush3.bf16.msra.mxu1 %v5847_v13 }
 0x5e6   :  { %4970 = vmatprep.subr.bf16.mxu1 %v5918_v36 }
 0x5e9   :  { %4971 = vmatpush3.bf16.msra.mxu1 %v5848_v28 }
 0x5ea   :  { %4972 = vmatprep.subr.bf16.mxu1 %v5918_v36 }
 0x5ed   :  { %4973 = vmatpush3.bf16.msra.mxu1 %v5849_v5 }
 0x5ee   :  { %4974 = vmatprep.subr.bf16.mxu1 %v5918_v36 }
 0x5f1   :  { %4975 = vmatpush3.bf16.msra.mxu1 %v5850_v58 }
 0x5f2   :  { %4976 = vmatprep.subr.bf16.mxu1 %v5918_v36 }
 0x5f5   :  { %4977 = vmatpush3.bf16.msra.mxu1 %v5851_v44 }
 0x5f6   :  { %4978 = vmatprep.subr.bf16.mxu1 %v5918_v36  ;;  %v4478_v36 = vlaneseq }
 0x5f8   :  { %v4479_v54 = vand.u32 127, %v4478_v36 }
 0x5f9   :  { %4979 = vmatpush3.bf16.msra.mxu1 %v5852_v30 }
 0x5fa   :  { %vm4480_vm3 = vcmp.lt.s32.totalorder %v4479_v54, 10 }
 0x6af   :  { %v4352_v45 = vpop.f32.mrb[132].mxu1 }
 0x6b0   :  { %v5076_v6 = vadd.f32 %v4842_v14, %v4352_v45  ;;  %v4962_v35 = vpop.f32.mrb[133].mxu1 }
 0x6b1   :  { %v4355_v46 = vpop.f32.mrb[134].mxu1 }
 0x6b2   :  { %v5077_v3 = vadd.f32 %v4842_v14, %v4355_v46  ;;  %v4963_v38 = vpop.f32.mrb[135].mxu1  ;;  %v4361_v8 = vmax.f32 %v5076_v6, 0.0 }
 0x6b4   :  { %v4362_v29 = vmax.f32 %v5077_v3, 0.0 }
 0x6b6   :  { %v4363_v1 = vpack.c.bf16 %v4362_v29, %v4361_v8 }
 0x6b8   :  { %4981 = vmatmul.mubr.bf16.vlgmr.msra.gmra.mrb[136].mxu1 %v4363_v1 }
 0x78b   :  { %v4469_v26 = vpop.f32.mrb[136].mxu1 }
 0x78c   :  { %v4470_v24 = vadd.f32 %v4859_v25, %v4469_v26  ;;  %v4982_v61 = vpop.f32.mrb[137].mxu1 }
 0x78d   :  { %v4472_v60 = vpop.f32.mrb[138].mxu1 }
 0x78e   :  { %v4476_v23 = vmax.f32 %v4470_v24, 0.0  ;;  %v4473_v62 = vadd.f32 %v4859_v25, %v4472_v60  ;;  %v4983_v49 = vpop.f32.mrb[139].mxu1 }
 0x790   :  { %v4477_v0 = vmax.f32 %v4473_v62, 0.0  ;;  %v4481_v37 = vsel %vm4480_vm3, %v4476_v23, -1e+30 }
 0x791   :  { %4483 = vmax.xlane.f32.xlu0 %v4481_v37 }
 0x792   :  { %v4482_v15 = vsel %vm4480_vm3, %v4477_v0, -1e+30 }
 0x795   :  { %4485 = vmax.xlane.f32.xlu0 %v4482_v15 }
 0x81e   :  { %v4484_v31 = vpop.xlane.xlu0 %4483 }
 0x81f   :  { %v4487_v32 = vsub.f32 %v4481_v37, %v4484_v31 }
 0x821   :  { %v4489_v33 = vmul.f32 1.442695, %v4487_v32 }
 0x822   :  { %v4486_v52 = vpop.xlane.xlu0 %4485 }
 0x823   :  { %v4488_v40 = vsub.f32 %v4482_v15, %v4486_v52  ;;  %5853 = vpow2.f32 %v4489_v33 }
 0x825   :  { %v4491_v16 = vmul.f32 1.442695, %v4488_v40 }
 0x827   :  { %5855 = vpow2.f32 %v4491_v16 }
 0x82d   :  { %v5854_v17 = vpop.eup %5853 }
 0x82e   :  { %4493 = vadd.xlane.f32.xlu1 %v5854_v17 }
 0x831   :  { %v5856_v59 = vpop.eup %5855 }
 0x832   :  { %4495 = vadd.xlane.f32.xlu1 %v5856_v59 }
 0x8bb   :  { %v4494_v18 = vpop.xlane.xlu1 %4493 }
 0x8bc   :  { %5857 = vlog2.f32 %v4494_v18 }
 0x8bf   :  { %v4496_v56 = vpop.xlane.xlu1 %4495 }
 0x8c0   :  { %5859 = vlog2.f32 %v4496_v56 }
 0x8c6   :  { %v5858_v27 = vpop.eup %5857 }
 0x8c7   :  { %v4498_v9 = vmul.f32 0.6931472, %v5858_v27 }
 0x8c9   :  { %v4501_v34 = vsub.f32 %v4487_v32, %v4498_v9 }
 0x8ca   :  { %v5860_v39 = vpop.eup %5859 }
 0x8cb   :  { %4503 = vst [vmem:[%s7228_s9] sm:$0xff] %v4501_v34  ;;  %v4500_v2 = vmul.f32 0.6931472, %v5860_v39 }
 0x8cd   :  { %v4502_v43 = vsub.f32 %v4488_v40, %v4500_v2 }
 0x8cf   :  { %4504 = vst [vmem:[%s7228_s9 + $0x8] sm:$0xff] %v4502_v43 }
 0x8d0   :  { %4509 = vsyncpa [#allocation3], 1 }
 0x8d1   :  { %4510 = vsyncpa [#allocation5], 1 }

</bundles_post_ra>
